<compile_context>
chip_gen: v5e
topology: v5e:2x2
jax: 0.10.0
libtpu: 0.0.40
codegen_flags: <defaults>
</compile_context>

<pallas_src>
import jax
import jax.numpy as jnp
from jax.experimental import pallas as pl
from jax.experimental.pallas import tpu as pltpu


_LANE = 128          # keep channel dims multiples of this -> lane-dense stores
_TARGET_ROWS = 512   # target matmul M (rows) per grid step


def _pad_to(n, m):
    return ((n + m - 1) // m) * m


def _nbytes(shape, dtype):
    n = 1
    for s in shape:
        n *= int(s)
    return n * jnp.dtype(dtype).itemsize


def _pick_row_tile(ho, wo):
    """Output-row tile along H.  Only tile several H rows together when Wo is
    sublane-aligned so the in-kernel flatten stays layout-trivial."""
    if wo % 8 != 0:
        return 1
    cap = min(ho, max(1, _TARGET_ROWS // wo))
    for d in range(cap, 0, -1):
        if ho % d == 0:
            return d
    return 1


# ---------------------------------------------------------------------------
# Kernels
# ---------------------------------------------------------------------------

def _make_conv_kernel(stride, th, wo, cin, coutp, *, pool_proj=False, inv_hw=1.0):
    """3x3 conv (pad 1) + folded BatchNorm + ReLU as 9 accumulated matmuls.

    pool_proj=True additionally fuses global average pool + embedding
    projection via a VMEM scratch accumulator (pl.when init/finalize).
    """
    nph = stride * stride
    n_rows = th * wo

    def kernel(*args):
        phase_refs = args[:nph]
        if pool_proj:
            (w_ref, scale_ref, bias_ref, pw_ref, pb_ref, emb_ref,
             pool_ref) = args[nph:]
        else:
            (w_ref, scale_ref, bias_ref, o_ref) = args[nph:]

        t = pl.program_id(1)
        r0 = t * th                                    # first output row of tile

        acc = jnp.zeros((n_rows, coutp), jnp.float32)
        for di in range(3):
            for dj in range(3):
                a, hoff = di % stride, di // stride
                b, woff = dj % stride, dj // stride
                ph = phase_refs[a * stride + b]
                slab = ph[0, pl.ds(r0 + hoff, th), pl.ds(woff, wo), :]
                slab = slab.reshape(n_rows, cin)
                wmat = w_ref[di, dj]                   # (cin, coutp)
                if cin == 1:
                    # Contraction length 1: outer product on the VPU; keep the
                    # MXU for the wide layers.
                    acc = acc + (slab.astype(jnp.float32)
                                 * wmat.astype(jnp.float32))
                else:
                    acc = acc + jnp.dot(slab, wmat,
                                        preferred_element_type=jnp.float32)

        # Folded-BN + ReLU epilogue in f32; scale/bias are VMEM-resident.
        acc = jnp.maximum(acc * scale_ref[...] + bias_ref[...], 0.0)

        if pool_proj:
            @pl.when(t == 0)
            def _init():
                pool_ref[...] = jnp.zeros_like(pool_ref)

            pool_ref[...] = pool_ref[...] + jnp.sum(acc, axis=0, keepdims=True)

            @pl.when(t == pl.num_programs(1) - 1)
            def _finalize():
                pooled = (pool_ref[...] * inv_hw).astype(jnp.bfloat16)
                emb_ref[0] = (jnp.dot(pooled, pw_ref[...],
                                      preferred_element_type=jnp.float32)
                              + pb_ref[...])
        else:
            if th == 1:
                o_ref[0, 0] = acc.astype(o_ref.dtype)
            else:
                o_ref[0] = acc.reshape(th, wo, coutp).astype(o_ref.dtype)

    return kernel


def _patch_pool_proj_kernel(p_ref, w_ref, b_ref, o_ref):
    """Mean over patches then linear projection (CLIP image-encoder stand-in)."""
    pooled = jnp.mean(p_ref[0].astype(jnp.float32), axis=0, keepdims=True)
    o_ref[0] = (jnp.dot(pooled.astype(jnp.bfloat16), w_ref[...],
                        preferred_element_type=jnp.float32) + b_ref[...])


# ---------------------------------------------------------------------------
# pallas_call wrappers
# ---------------------------------------------------------------------------

def _conv_layer(x, w, scale, bias, stride, *, pool_proj=False,
                proj_w=None, proj_b=None):
    """x: (B,H,W,Cin) bf16; w: (3,3,Cin,Coutp) bf16; scale/bias: (1,Coutp) f32.

    Returns (B,Ho,Wo,Coutp) bf16, or with pool_proj the (B,Ep) f32 embedding.
    """
    B, H, W, cin = x.shape
    coutp = w.shape[-1]
    ho = (H + 2 - 3) // stride + 1
    wo = (W + 2 - 3) // stride + 1

    # Spatial phase decomposition of the padded input (stride-2 layers) so all
    # in-kernel slices are unit-stride; ~1x activation HBM volume, not 9x.
    xp = jnp.pad(x, ((0, 0), (1, 1), (1, 1), (0, 0)))
    if stride == 1:
        phases = [xp]
    else:
        phases = [xp[:, a::stride, b::stride, :]
                  for a in range(stride) for b in range(stride)]

    th = _pick_row_tile(ho, wo)
    n_tiles = ho // th
    grid = (B, n_tiles)

    phase_specs = [pl.BlockSpec((1,) + p.shape[1:], lambda bb, tt: (bb, 0, 0, 0))
                   for p in phases]
    w_spec = pl.BlockSpec(w.shape, lambda bb, tt: (0, 0, 0, 0))
    vec_spec = pl.BlockSpec((1, coutp), lambda bb, tt: (0, 0))

    # Explicit VMEM budget: double-buffered activation/output blocks + resident
    # weights/vectors, capped under v7x's 64 MiB physical VMEM.
    est = sum(2 * _nbytes((1,) + p.shape[1:], p.dtype) for p in phases)
    est += _nbytes(w.shape, w.dtype) + 2 * _nbytes((1, coutp), jnp.float32)

    if pool_proj:
        ep = proj_w.shape[-1]
        kernel = _make_conv_kernel(stride, th, wo, cin, coutp,
                                   pool_proj=True, inv_hw=1.0 / float(ho * wo))
        in_specs = phase_specs + [
            w_spec, vec_spec, vec_spec,
            pl.BlockSpec(proj_w.shape, lambda bb, tt: (0, 0)),
            pl.BlockSpec((1, ep), lambda bb, tt: (0, 0)),
        ]
        out_specs = pl.BlockSpec((1, 1, ep), lambda bb, tt: (bb, 0, 0))
        out_shape = jax.ShapeDtypeStruct((B, 1, ep), jnp.float32)
        scratch = [pltpu.VMEM((1, coutp), jnp.float32)]
        est += (_nbytes(proj_w.shape, proj_w.dtype)
                + _nbytes((1, ep), jnp.float32)
                + 2 * _nbytes((1, 1, ep), jnp.float32)
                + _nbytes((1, coutp), jnp.float32))
        # Row axis carries the pooled-sum accumulator -> "arbitrary"; batch is
        # independent -> "parallel" (split across v7x's 2 TensorCores).
        semantics = ("parallel", "arbitrary")
        operands = (*phases, w, scale, bias, proj_w, proj_b)
    else:
        kernel = _make_conv_kernel(stride, th, wo, cin, coutp)
        in_specs = phase_specs + [w_spec, vec_spec, vec_spec]
        out_specs = pl.BlockSpec((1, th, wo, coutp),
                                 lambda bb, tt: (bb, tt, 0, 0))
        out_shape = jax.ShapeDtypeStruct((B, ho, wo, coutp), jnp.bfloat16)
        scratch = []
        est += 2 * _nbytes((1, th, wo, coutp), jnp.bfloat16)
        semantics = ("parallel", "parallel")
        operands = (*phases, w, scale, bias)

    vmem_limit = int(min(48 * 2**20, max(16 * 2**20, 2 * est)))

    out = pl.pallas_call(
        kernel,
        grid=grid,
        in_specs=in_specs,
        out_specs=out_specs,
        out_shape=out_shape,
        scratch_shapes=scratch,
        compiler_params=pltpu.CompilerParams(
            dimension_semantics=semantics,
            vmem_limit_bytes=vmem_limit),
    )(*operands)

    if pool_proj:
        return out[:, 0, :]
    return out


def _patch_pool_proj(patches, w, b):
    """patches: (B,N,Dp) bf16; w: (Dp,Ep) bf16; b: (1,Ep) f32 -> (B,Ep) f32."""
    B, N, Dp = patches.shape
    ep = w.shape[-1]
    est = (2 * _nbytes((1, N, Dp), patches.dtype) + _nbytes(w.shape, w.dtype)
           + _nbytes((1, ep), jnp.float32) + 2 * _nbytes((1, 1, ep), jnp.float32))
    vmem_limit = int(min(48 * 2**20, max(16 * 2**20, 2 * est)))
    out = pl.pallas_call(
        _patch_pool_proj_kernel,
        grid=(B,),
        in_specs=[pl.BlockSpec((1, N, Dp), lambda bb: (bb, 0, 0)),
                  pl.BlockSpec((Dp, ep), lambda bb: (0, 0)),
                  pl.BlockSpec((1, ep), lambda bb: (0, 0))],
        out_specs=pl.BlockSpec((1, 1, ep), lambda bb: (bb, 0, 0)),
        out_shape=jax.ShapeDtypeStruct((B, 1, ep), jnp.float32),
        compiler_params=pltpu.CompilerParams(
            dimension_semantics=("parallel",),
            vmem_limit_bytes=vmem_limit),
    )(patches, w, b)
    return out[:, 0, :]


# ---------------------------------------------------------------------------
# Model (deterministic synthetic parameters)
# ---------------------------------------------------------------------------

class DepthClipModelPallas:
    """ResNet-style depth encoder + patch-embed image encoder (Pallas)."""

    N_FILTERS = [32, 64, 128, 256, 512]
    STRIDES = [2, 2, 2, 2, 1]
    EMBED_DIM = 32            # stand-in for clip_model.config.projection_dim
    PATCH = 4                 # image-encoder patch size
    BN_EPS = 1e-5

    def __init__(self, key, temperature=0.07):
        self.temperature = jnp.asarray(temperature, jnp.float32)  # unused in fwd
        ks = list(jax.random.split(key, len(self.N_FILTERS) + 2))

        # Depth encoder conv stack; channel dims padded to 128-multiples so all
        # kernel stores are lane-dense (padded slots are exact zeros throughout).
        self.conv_w, self.bn_scale, self.bn_bias = [], [], []
        cin, cin_p = 1, 1
        for i, cout in enumerate(self.N_FILTERS):
            cout_p = _pad_to(cout, _LANE)
            fan_in = 3 * 3 * cin
            bound = 1.0 / float(fan_in) ** 0.5   # PyTorch kaiming_uniform_(a=sqrt(5))
            w_real = jax.random.uniform(ks[i], (3, 3, cin, cout),
                                        jnp.float32, -bound, bound)
            w = jnp.zeros((3, 3, cin_p, cout_p), jnp.float32)
            w = w.at[:, :, :cin, :cout].set(w_real)
            self.conv_w.append(w.astype(jnp.bfloat16))

            # BatchNorm (eval: gamma=1, beta=0, mean=0, var=1) folded to scale/bias.
            scale = jnp.ones((cout,), jnp.float32) / jnp.sqrt(1.0 + self.BN_EPS)
            bias = jnp.zeros((cout,), jnp.float32)
            self.bn_scale.append(
                jnp.zeros((1, cout_p), jnp.float32).at[0, :cout].set(scale))
            self.bn_bias.append(
                jnp.zeros((1, cout_p), jnp.float32).at[0, :cout].set(bias))
            cin, cin_p = cout, cout_p

        # Depth embedding projection (512 -> EMBED_DIM), lane-padded output.
        c_final = self.N_FILTERS[-1]
        ep = _pad_to(self.EMBED_DIM, _LANE)
        self._ep = ep
        bound = 1.0 / float(c_final) ** 0.5
        pw = jax.random.uniform(ks[-2], (c_final, self.EMBED_DIM),
                                jnp.float32, -bound, bound)
        self.proj_w = (jnp.zeros((c_final, ep), jnp.float32)
                       .at[:, :self.EMBED_DIM].set(pw)).astype(jnp.bfloat16)
        self.proj_b = jnp.zeros((1, ep), jnp.float32)

        # Image encoder: linear patch embedding + mean pool.
        # TODO(synk): the real pretrained CLIP vision transformer is not
        # reproduced here; this is a structural stand-in.
        pdim = 3 * self.PATCH * self.PATCH
        pdim_p = _pad_to(pdim, _LANE)
        self._pdim, self._pdim_p = pdim, pdim_p
        bound = 1.0 / float(pdim) ** 0.5
        iw = jax.random.uniform(ks[-1], (pdim, self.EMBED_DIM),
                                jnp.float32, -bound, bound)
        self.img_w = (jnp.zeros((pdim_p, ep), jnp.float32)
                      .at[:pdim, :self.EMBED_DIM].set(iw)).astype(jnp.bfloat16)
        self.img_b = jnp.zeros((1, ep), jnp.float32)

    # -- encoders -----------------------------------------------------------
    def depth_encoder(self, depth_map_nchw):
        x = jnp.transpose(depth_map_nchw, (0, 2, 3, 1)).astype(jnp.bfloat16)
        n = len(self.N_FILTERS)
        for i in range(n - 1):
            x = _conv_layer(x, self.conv_w[i], self.bn_scale[i],
                            self.bn_bias[i], self.STRIDES[i])
        # Final conv + global-average-pool + projection fused in one kernel.
        emb = _conv_layer(x, self.conv_w[-1], self.bn_scale[-1],
                          self.bn_bias[-1], self.STRIDES[-1],
                          pool_proj=True, proj_w=self.proj_w, proj_b=self.proj_b)
        return emb[:, :self.EMBED_DIM]

    def image_encoder(self, image_nchw):
        x = jnp.transpose(image_nchw, (0, 2, 3, 1)).astype(jnp.bfloat16)
        B, H, W, C = x.shape
        P = self.PATCH
        x = x.reshape(B, H // P, P, W // P, P, C)
        x = jnp.transpose(x, (0, 1, 3, 2, 4, 5))
        patches = x.reshape(B, (H // P) * (W // P), P * P * C)
        patches = jnp.pad(patches,
                          ((0, 0), (0, 0), (0, self._pdim_p - self._pdim)))
        emb = _patch_pool_proj(patches, self.img_w, self.img_b)
        return emb[:, :self.EMBED_DIM]

    # -- pure-JAX reference for the self-check in __main__ -------------------
    def depth_encoder_reference(self, depth_map_nchw):
        hi = jax.lax.Precision.HIGHEST
        x = jnp.transpose(depth_map_nchw, (0, 2, 3, 1)).astype(jnp.bfloat16)
        n = len(self.N_FILTERS)
        for i in range(n):
            y = jax.lax.conv_general_dilated(
                x.astype(jnp.float32), self.conv_w[i].astype(jnp.float32),
                window_strides=(self.STRIDES[i],) * 2, padding=((1, 1), (1, 1)),
                dimension_numbers=("NHWC", "HWIO", "NHWC"), precision=hi)
            y = jnp.maximum(y * self.bn_scale[i].reshape(1, 1, 1, -1)
                            + self.bn_bias[i].reshape(1, 1, 1, -1), 0.0)
            x = y.astype(jnp.bfloat16) if i < n - 1 else y
        pooled = jnp.mean(x, axis=(1, 2)).astype(jnp.bfloat16).astype(jnp.float32)
        emb = (jnp.dot(pooled, self.proj_w.astype(jnp.float32), precision=hi)
               + self.proj_b)
        return emb[:, :self.EMBED_DIM]

    # -- forward --------------------------------------------------------------
    def forward(self, depth_map, class_descriptions=None, image=None):
        if image is not None and image.shape[0] != depth_map.shape[0]:
            raise ValueError("Batch size mismatch between depth_map and image.")
        depth_embedding = self.depth_encoder(depth_map)
        text_embeddings = None
        # TODO(synk): CLIP text encoder over string class_descriptions
        # (tokenizer + pretrained transformer) has no Pallas equivalent -> None.
        image_embedding = None
        if image is not None:
            image_embedding = self.image_encoder(image)
        return depth_embedding, text_embeddings, image_embedding


# ---------------------------------------------------------------------------
# Main
# ---------------------------------------------------------------------------

if __name__ == "__main__":
    key = jax.random.PRNGKey(0)
    k_model, k_depth, k_img = jax.random.split(key, 3)

    B, H, W = 2, 16, 16
    depth_map = jax.random.normal(k_depth, (B, 1, H, W), jnp.float32)  # NCHW
    image = jax.random.normal(k_img, (B, 3, H, W), jnp.float32)        # NCHW

    model = DepthClipModelPallas(k_model)

    depth_emb, text_emb, image_emb = model.forward(
        depth_map, class_descriptions=None, image=image)

    depth_emb = jax.block_until_ready(depth_emb)
    image_emb = jax.block_until_ready(image_emb)

    assert depth_emb.shape == (B, model.EMBED_DIM)
    assert image_emb.shape == (B, model.EMBED_DIM)
    assert text_emb is None
    assert bool(jnp.isfinite(depth_emb).all())
    assert bool(jnp.isfinite(image_emb).all())

    # Cross-check the fused depth-encoder kernels against a pure-JAX reference.
    ref = jax.block_until_ready(model.depth_encoder_reference(depth_map))
    assert bool(jnp.allclose(depth_emb, ref, rtol=2e-2, atol=1e-4)), (
        "Pallas depth embedding diverges from reference")

    print("KERNEL_OK")
</pallas_src>

<mosaic_0001>
module attributes {stable_mosaic.version = 11 : i64} {
  func.func @kernel(%arg0: i32, %arg1: i32, %arg2: memref<1x9x9x1xbf16, #tpu.memory_space<vmem>>, %arg3: memref<1x9x9x1xbf16, #tpu.memory_space<vmem>>, %arg4: memref<1x9x9x1xbf16, #tpu.memory_space<vmem>>, %arg5: memref<1x9x9x1xbf16, #tpu.memory_space<vmem>>, %arg6: memref<3x3x1x128xbf16, #tpu.memory_space<vmem>>, %arg7: memref<1x128xf32, #tpu.memory_space<vmem>>, %arg8: memref<1x128xf32, #tpu.memory_space<vmem>>, %arg9: memref<1x8x8x128xbf16, #tpu.memory_space<vmem>>) attributes {dimension_semantics = [#tpu.dimension_semantics<parallel>, #tpu.dimension_semantics<parallel>], iteration_bounds = array<i64: 2, 1>, scalar_prefetch = 0 : i64, scratch_operands = 0 : i64, tpu.core_type = #tpu.core_type<tc>, window_params = [{transform_indices = @transform_0, window_bounds = array<i64: 1, 9, 9, 1>}, {transform_indices = @transform_1, window_bounds = array<i64: 1, 9, 9, 1>}, {transform_indices = @transform_2, window_bounds = array<i64: 1, 9, 9, 1>}, {transform_indices = @transform_3, window_bounds = array<i64: 1, 9, 9, 1>}, {pipeline_mode = #tpu.pipeline_mode<synchronous>, transform_indices = @transform_4, window_bounds = array<i64: 3, 3, 1, 128>}, {pipeline_mode = #tpu.pipeline_mode<synchronous>, transform_indices = @transform_5, window_bounds = array<i64: 1, 128>}, {pipeline_mode = #tpu.pipeline_mode<synchronous>, transform_indices = @transform_6, window_bounds = array<i64: 1, 128>}, {transform_indices = @transform_7, window_bounds = array<i64: 1, 8, 8, 128>}]} {
    %c8_i32 = arith.constant 8 : i32
    %0 = arith.muli %arg1, %c8_i32 : i32
    %cst = arith.constant 0.000000e+00 : f32
    %1 = vector.broadcast %cst : f32 to vector<64x128xf32>
    %c0_i32 = arith.constant 0 : i32
    %2 = arith.addi %0, %c0_i32 : i32
    %c0 = arith.constant 0 : index
    %3 = arith.index_cast %2 : i32 to index
    %c0_0 = arith.constant 0 : index
    %c0_1 = arith.constant 0 : index
    %4 = vector.load %arg2[%c0, %3, %c0_0, %c0_1] : memref<1x9x9x1xbf16, #tpu.memory_space<vmem>>, vector<1x8x8x1xbf16>
    %5 = vector.shape_cast %4 : vector<1x8x8x1xbf16> to vector<8x8x1xbf16>
    %6 = vector.shape_cast %5 : vector<8x8x1xbf16> to vector<64x1xbf16>
    %c0_2 = arith.constant 0 : index
    %c0_3 = arith.constant 0 : index
    %c0_4 = arith.constant 0 : index
    %c0_5 = arith.constant 0 : index
    %7 = vector.load %arg6[%c0_2, %c0_3, %c0_4, %c0_5] : memref<3x3x1x128xbf16, #tpu.memory_space<vmem>>, vector<1x1x1x128xbf16>
    %8 = vector.shape_cast %7 : vector<1x1x1x128xbf16> to vector<1x128xbf16>
    %9 = arith.extf %6 : vector<64x1xbf16> to vector<64x1xf32>
    %10 = arith.extf %8 : vector<1x128xbf16> to vector<1x128xf32>
    %11 = vector.broadcast %9 : vector<64x1xf32> to vector<64x128xf32>
    %12 = vector.broadcast %10 : vector<1x128xf32> to vector<64x128xf32>
    %13 = arith.mulf %11, %12 : vector<64x128xf32>
    %14 = arith.addf %1, %13 : vector<64x128xf32>
    %c0_i32_6 = arith.constant 0 : i32
    %15 = arith.addi %0, %c0_i32_6 : i32
    %c0_7 = arith.constant 0 : index
    %16 = arith.index_cast %15 : i32 to index
    %c0_8 = arith.constant 0 : index
    %c0_9 = arith.constant 0 : index
    %17 = vector.load %arg3[%c0_7, %16, %c0_8, %c0_9] : memref<1x9x9x1xbf16, #tpu.memory_space<vmem>>, vector<1x8x8x1xbf16>
    %18 = vector.shape_cast %17 : vector<1x8x8x1xbf16> to vector<8x8x1xbf16>
    %19 = vector.shape_cast %18 : vector<8x8x1xbf16> to vector<64x1xbf16>
    %c0_10 = arith.constant 0 : index
    %c1 = arith.constant 1 : index
    %c0_11 = arith.constant 0 : index
    %c0_12 = arith.constant 0 : index
    %20 = vector.load %arg6[%c0_10, %c1, %c0_11, %c0_12] : memref<3x3x1x128xbf16, #tpu.memory_space<vmem>>, vector<1x1x1x128xbf16>
    %21 = vector.shape_cast %20 : vector<1x1x1x128xbf16> to vector<1x128xbf16>
    %22 = arith.extf %19 : vector<64x1xbf16> to vector<64x1xf32>
    %23 = arith.extf %21 : vector<1x128xbf16> to vector<1x128xf32>
    %24 = vector.broadcast %22 : vector<64x1xf32> to vector<64x128xf32>
    %25 = vector.broadcast %23 : vector<1x128xf32> to vector<64x128xf32>
    %26 = arith.mulf %24, %25 : vector<64x128xf32>
    %27 = arith.addf %14, %26 : vector<64x128xf32>
    %c0_i32_13 = arith.constant 0 : i32
    %28 = arith.addi %0, %c0_i32_13 : i32
    %c0_14 = arith.constant 0 : index
    %29 = arith.index_cast %28 : i32 to index
    %c1_15 = arith.constant 1 : index
    %c0_16 = arith.constant 0 : index
    %30 = vector.load %arg2[%c0_14, %29, %c1_15, %c0_16] : memref<1x9x9x1xbf16, #tpu.memory_space<vmem>>, vector<1x8x8x1xbf16>
    %31 = vector.shape_cast %30 : vector<1x8x8x1xbf16> to vector<8x8x1xbf16>
    %32 = vector.shape_cast %31 : vector<8x8x1xbf16> to vector<64x1xbf16>
    %c0_17 = arith.constant 0 : index
    %c2 = arith.constant 2 : index
    %c0_18 = arith.constant 0 : index
    %c0_19 = arith.constant 0 : index
    %33 = vector.load %arg6[%c0_17, %c2, %c0_18, %c0_19] : memref<3x3x1x128xbf16, #tpu.memory_space<vmem>>, vector<1x1x1x128xbf16>
    %34 = vector.shape_cast %33 : vector<1x1x1x128xbf16> to vector<1x128xbf16>
    %35 = arith.extf %32 : vector<64x1xbf16> to vector<64x1xf32>
    %36 = arith.extf %34 : vector<1x128xbf16> to vector<1x128xf32>
    %37 = vector.broadcast %35 : vector<64x1xf32> to vector<64x128xf32>
    %38 = vector.broadcast %36 : vector<1x128xf32> to vector<64x128xf32>
    %39 = arith.mulf %37, %38 : vector<64x128xf32>
    %40 = arith.addf %27, %39 : vector<64x128xf32>
    %c0_i32_20 = arith.constant 0 : i32
    %41 = arith.addi %0, %c0_i32_20 : i32
    %c0_21 = arith.constant 0 : index
    %42 = arith.index_cast %41 : i32 to index
    %c0_22 = arith.constant 0 : index
    %c0_23 = arith.constant 0 : index
    %43 = vector.load %arg4[%c0_21, %42, %c0_22, %c0_23] : memref<1x9x9x1xbf16, #tpu.memory_space<vmem>>, vector<1x8x8x1xbf16>
    %44 = vector.shape_cast %43 : vector<1x8x8x1xbf16> to vector<8x8x1xbf16>
    %45 = vector.shape_cast %44 : vector<8x8x1xbf16> to vector<64x1xbf16>
    %c1_24 = arith.constant 1 : index
    %c0_25 = arith.constant 0 : index
    %c0_26 = arith.constant 0 : index
    %c0_27 = arith.constant 0 : index
    %46 = vector.load %arg6[%c1_24, %c0_25, %c0_26, %c0_27] : memref<3x3x1x128xbf16, #tpu.memory_space<vmem>>, vector<1x1x1x128xbf16>
    %47 = vector.shape_cast %46 : vector<1x1x1x128xbf16> to vector<1x128xbf16>
    %48 = arith.extf %45 : vector<64x1xbf16> to vector<64x1xf32>
    %49 = arith.extf %47 : vector<1x128xbf16> to vector<1x128xf32>
    %50 = vector.broadcast %48 : vector<64x1xf32> to vector<64x128xf32>
    %51 = vector.broadcast %49 : vector<1x128xf32> to vector<64x128xf32>
    %52 = arith.mulf %50, %51 : vector<64x128xf32>
    %53 = arith.addf %40, %52 : vector<64x128xf32>
    %c0_i32_28 = arith.constant 0 : i32
    %54 = arith.addi %0, %c0_i32_28 : i32
    %c0_29 = arith.constant 0 : index
    %55 = arith.index_cast %54 : i32 to index
    %c0_30 = arith.constant 0 : index
    %c0_31 = arith.constant 0 : index
    %56 = vector.load %arg5[%c0_29, %55, %c0_30, %c0_31] : memref<1x9x9x1xbf16, #tpu.memory_space<vmem>>, vector<1x8x8x1xbf16>
    %57 = vector.shape_cast %56 : vector<1x8x8x1xbf16> to vector<8x8x1xbf16>
    %58 = vector.shape_cast %57 : vector<8x8x1xbf16> to vector<64x1xbf16>
    %c1_32 = arith.constant 1 : index
    %c1_33 = arith.constant 1 : index
    %c0_34 = arith.constant 0 : index
    %c0_35 = arith.constant 0 : index
    %59 = vector.load %arg6[%c1_32, %c1_33, %c0_34, %c0_35] : memref<3x3x1x128xbf16, #tpu.memory_space<vmem>>, vector<1x1x1x128xbf16>
    %60 = vector.shape_cast %59 : vector<1x1x1x128xbf16> to vector<1x128xbf16>
    %61 = arith.extf %58 : vector<64x1xbf16> to vector<64x1xf32>
    %62 = arith.extf %60 : vector<1x128xbf16> to vector<1x128xf32>
    %63 = vector.broadcast %61 : vector<64x1xf32> to vector<64x128xf32>
    %64 = vector.broadcast %62 : vector<1x128xf32> to vector<64x128xf32>
    %65 = arith.mulf %63, %64 : vector<64x128xf32>
    %66 = arith.addf %53, %65 : vector<64x128xf32>
    %c0_i32_36 = arith.constant 0 : i32
    %67 = arith.addi %0, %c0_i32_36 : i32
    %c0_37 = arith.constant 0 : index
    %68 = arith.index_cast %67 : i32 to index
    %c1_38 = arith.constant 1 : index
    %c0_39 = arith.constant 0 : index
    %69 = vector.load %arg4[%c0_37, %68, %c1_38, %c0_39] : memref<1x9x9x1xbf16, #tpu.memory_space<vmem>>, vector<1x8x8x1xbf16>
    %70 = vector.shape_cast %69 : vector<1x8x8x1xbf16> to vector<8x8x1xbf16>
    %71 = vector.shape_cast %70 : vector<8x8x1xbf16> to vector<64x1xbf16>
    %c1_40 = arith.constant 1 : index
    %c2_41 = arith.constant 2 : index
    %c0_42 = arith.constant 0 : index
    %c0_43 = arith.constant 0 : index
    %72 = vector.load %arg6[%c1_40, %c2_41, %c0_42, %c0_43] : memref<3x3x1x128xbf16, #tpu.memory_space<vmem>>, vector<1x1x1x128xbf16>
    %73 = vector.shape_cast %72 : vector<1x1x1x128xbf16> to vector<1x128xbf16>
    %74 = arith.extf %71 : vector<64x1xbf16> to vector<64x1xf32>
    %75 = arith.extf %73 : vector<1x128xbf16> to vector<1x128xf32>
    %76 = vector.broadcast %74 : vector<64x1xf32> to vector<64x128xf32>
    %77 = vector.broadcast %75 : vector<1x128xf32> to vector<64x128xf32>
    %78 = arith.mulf %76, %77 : vector<64x128xf32>
    %79 = arith.addf %66, %78 : vector<64x128xf32>
    %c1_i32 = arith.constant 1 : i32
    %80 = arith.addi %0, %c1_i32 : i32
    %c0_44 = arith.constant 0 : index
    %81 = arith.index_cast %80 : i32 to index
    %c0_45 = arith.constant 0 : index
    %c0_46 = arith.constant 0 : index
    %82 = vector.load %arg2[%c0_44, %81, %c0_45, %c0_46] : memref<1x9x9x1xbf16, #tpu.memory_space<vmem>>, vector<1x8x8x1xbf16>
    %83 = vector.shape_cast %82 : vector<1x8x8x1xbf16> to vector<8x8x1xbf16>
    %84 = vector.shape_cast %83 : vector<8x8x1xbf16> to vector<64x1xbf16>
    %c2_47 = arith.constant 2 : index
    %c0_48 = arith.constant 0 : index
    %c0_49 = arith.constant 0 : index
    %c0_50 = arith.constant 0 : index
    %85 = vector.load %arg6[%c2_47, %c0_48, %c0_49, %c0_50] : memref<3x3x1x128xbf16, #tpu.memory_space<vmem>>, vector<1x1x1x128xbf16>
    %86 = vector.shape_cast %85 : vector<1x1x1x128xbf16> to vector<1x128xbf16>
    %87 = arith.extf %84 : vector<64x1xbf16> to vector<64x1xf32>
    %88 = arith.extf %86 : vector<1x128xbf16> to vector<1x128xf32>
    %89 = vector.broadcast %87 : vector<64x1xf32> to vector<64x128xf32>
    %90 = vector.broadcast %88 : vector<1x128xf32> to vector<64x128xf32>
    %91 = arith.mulf %89, %90 : vector<64x128xf32>
    %92 = arith.addf %79, %91 : vector<64x128xf32>
    %c1_i32_51 = arith.constant 1 : i32
    %93 = arith.addi %0, %c1_i32_51 : i32
    %c0_52 = arith.constant 0 : index
    %94 = arith.index_cast %93 : i32 to index
    %c0_53 = arith.constant 0 : index
    %c0_54 = arith.constant 0 : index
    %95 = vector.load %arg3[%c0_52, %94, %c0_53, %c0_54] : memref<1x9x9x1xbf16, #tpu.memory_space<vmem>>, vector<1x8x8x1xbf16>
    %96 = vector.shape_cast %95 : vector<1x8x8x1xbf16> to vector<8x8x1xbf16>
    %97 = vector.shape_cast %96 : vector<8x8x1xbf16> to vector<64x1xbf16>
    %c2_55 = arith.constant 2 : index
    %c1_56 = arith.constant 1 : index
    %c0_57 = arith.constant 0 : index
    %c0_58 = arith.constant 0 : index
    %98 = vector.load %arg6[%c2_55, %c1_56, %c0_57, %c0_58] : memref<3x3x1x128xbf16, #tpu.memory_space<vmem>>, vector<1x1x1x128xbf16>
    %99 = vector.shape_cast %98 : vector<1x1x1x128xbf16> to vector<1x128xbf16>
    %100 = arith.extf %97 : vector<64x1xbf16> to vector<64x1xf32>
    %101 = arith.extf %99 : vector<1x128xbf16> to vector<1x128xf32>
    %102 = vector.broadcast %100 : vector<64x1xf32> to vector<64x128xf32>
    %103 = vector.broadcast %101 : vector<1x128xf32> to vector<64x128xf32>
    %104 = arith.mulf %102, %103 : vector<64x128xf32>
    %105 = arith.addf %92, %104 : vector<64x128xf32>
    %c1_i32_59 = arith.constant 1 : i32
    %106 = arith.addi %0, %c1_i32_59 : i32
    %c0_60 = arith.constant 0 : index
    %107 = arith.index_cast %106 : i32 to index
    %c1_61 = arith.constant 1 : index
    %c0_62 = arith.constant 0 : index
    %108 = vector.load %arg2[%c0_60, %107, %c1_61, %c0_62] : memref<1x9x9x1xbf16, #tpu.memory_space<vmem>>, vector<1x8x8x1xbf16>
    %109 = vector.shape_cast %108 : vector<1x8x8x1xbf16> to vector<8x8x1xbf16>
    %110 = vector.shape_cast %109 : vector<8x8x1xbf16> to vector<64x1xbf16>
    %c2_63 = arith.constant 2 : index
    %c2_64 = arith.constant 2 : index
    %c0_65 = arith.constant 0 : index
    %c0_66 = arith.constant 0 : index
    %111 = vector.load %arg6[%c2_63, %c2_64, %c0_65, %c0_66] : memref<3x3x1x128xbf16, #tpu.memory_space<vmem>>, vector<1x1x1x128xbf16>
    %112 = vector.shape_cast %111 : vector<1x1x1x128xbf16> to vector<1x128xbf16>
    %113 = arith.extf %110 : vector<64x1xbf16> to vector<64x1xf32>
    %114 = arith.extf %112 : vector<1x128xbf16> to vector<1x128xf32>
    %115 = vector.broadcast %113 : vector<64x1xf32> to vector<64x128xf32>
    %116 = vector.broadcast %114 : vector<1x128xf32> to vector<64x128xf32>
    %117 = arith.mulf %115, %116 : vector<64x128xf32>
    %118 = arith.addf %105, %117 : vector<64x128xf32>
    %c0_67 = arith.constant 0 : index
    %c0_68 = arith.constant 0 : index
    %119 = vector.load %arg7[%c0_67, %c0_68] : memref<1x128xf32, #tpu.memory_space<vmem>>, vector<1x128xf32>
    %120 = vector.broadcast %119 : vector<1x128xf32> to vector<64x128xf32>
    %121 = arith.mulf %118, %120 : vector<64x128xf32>
    %c0_69 = arith.constant 0 : index
    %c0_70 = arith.constant 0 : index
    %122 = vector.load %arg8[%c0_69, %c0_70] : memref<1x128xf32, #tpu.memory_space<vmem>>, vector<1x128xf32>
    %123 = vector.broadcast %122 : vector<1x128xf32> to vector<64x128xf32>
    %124 = arith.addf %121, %123 : vector<64x128xf32>
    %cst_71 = arith.constant 0.000000e+00 : f32
    %125 = vector.broadcast %cst_71 : f32 to vector<64x128xf32>
    %126 = arith.maximumf %124, %125 : vector<64x128xf32>
    %127 = vector.shape_cast %126 : vector<64x128xf32> to vector<8x8x128xf32>
    %128 = arith.truncf %127 : vector<8x8x128xf32> to vector<8x8x128xbf16>
    %c0_72 = arith.constant 0 : index
    %c0_73 = arith.constant 0 : index
    %c0_74 = arith.constant 0 : index
    %c0_75 = arith.constant 0 : index
    %129 = vector.load %arg9[%c0_72, %c0_73, %c0_74, %c0_75] : memref<1x8x8x128xbf16, #tpu.memory_space<vmem>>, vector<1x8x8x128xbf16>
    %130 = vector.shape_cast %129 : vector<1x8x8x128xbf16> to vector<8x8x128xbf16>
    %131 = vector.shape_cast %128 : vector<8x8x128xbf16> to vector<1x8x8x128xbf16>
    tpu.vector_store %arg9[%c0_72, %c0_73, %c0_74, %c0_75], %131 {strides = array<i32>} : memref<1x8x8x128xbf16, #tpu.memory_space<vmem>>, vector<1x8x8x128xbf16>,
    return
  }
  func.func @transform_0(%arg0: i32, %arg1: i32) -> (i32, i32, i32, i32) {
    %c0_i32 = arith.constant 0 : i32
    %c0_i32_0 = arith.constant 0 : i32
    %c0_i32_1 = arith.constant 0 : i32
    %c0_i32_2 = arith.constant 0 : i32
    return %arg0, %c0_i32, %c0_i32_0, %c0_i32_1 : i32, i32, i32, i32
  }
  func.func @transform_1(%arg0: i32, %arg1: i32) -> (i32, i32, i32, i32) {
    %c0_i32 = arith.constant 0 : i32
    %c0_i32_0 = arith.constant 0 : i32
    %c0_i32_1 = arith.constant 0 : i32
    %c0_i32_2 = arith.constant 0 : i32
    return %arg0, %c0_i32, %c0_i32_0, %c0_i32_1 : i32, i32, i32, i32
  }
  func.func @transform_2(%arg0: i32, %arg1: i32) -> (i32, i32, i32, i32) {
    %c0_i32 = arith.constant 0 : i32
    %c0_i32_0 = arith.constant 0 : i32
    %c0_i32_1 = arith.constant 0 : i32
    %c0_i32_2 = arith.constant 0 : i32
    return %arg0, %c0_i32, %c0_i32_0, %c0_i32_1 : i32, i32, i32, i32
  }
  func.func @transform_3(%arg0: i32, %arg1: i32) -> (i32, i32, i32, i32) {
    %c0_i32 = arith.constant 0 : i32
    %c0_i32_0 = arith.constant 0 : i32
    %c0_i32_1 = arith.constant 0 : i32
    %c0_i32_2 = arith.constant 0 : i32
    return %arg0, %c0_i32, %c0_i32_0, %c0_i32_1 : i32, i32, i32, i32
  }
  func.func @transform_4(%arg0: i32, %arg1: i32) -> (i32, i32, i32, i32) {
    %c0_i32 = arith.constant 0 : i32
    %c0_i32_0 = arith.constant 0 : i32
    %c0_i32_1 = arith.constant 0 : i32
    %c0_i32_2 = arith.constant 0 : i32
    %c0_i32_3 = arith.constant 0 : i32
    return %c0_i32, %c0_i32_0, %c0_i32_1, %c0_i32_2 : i32, i32, i32, i32
  }
  func.func @transform_5(%arg0: i32, %arg1: i32) -> (i32, i32) {
    %c0_i32 = arith.constant 0 : i32
    %c0_i32_0 = arith.constant 0 : i32
    %c0_i32_1 = arith.constant 0 : i32
    return %c0_i32, %c0_i32_0 : i32, i32
  }
  func.func @transform_6(%arg0: i32, %arg1: i32) -> (i32, i32) {
    %c0_i32 = arith.constant 0 : i32
    %c0_i32_0 = arith.constant 0 : i32
    %c0_i32_1 = arith.constant 0 : i32
    return %c0_i32, %c0_i32_0 : i32, i32
  }
  func.func @transform_7(%arg0: i32, %arg1: i32) -> (i32, i32, i32, i32) {
    %c0_i32 = arith.constant 0 : i32
    %c0_i32_0 = arith.constant 0 : i32
    %c0_i32_1 = arith.constant 0 : i32
    return %arg0, %arg1, %c0_i32, %c0_i32_0 : i32, i32, i32, i32
  }
}

</mosaic_0001>

<bundles_post_ra>
// kernel: tpu_custom_call.1
= control target key start
LH: loop header
LB: loop body
LE: loop exit
PB: predicated region body
PF: predicated region fallthrough
CT: control target
= control target key end

     0   :  { %12 = vsyncpa [#allocation3], 0  ;;  %s2632_s0 = inlined_call_operand.vmem [shape: bf16[2,9,9,1], index: 0, kind: input, shape index: {}]   ;;  %s2633_s1 = inlined_call_operand.vmem [shape: bf16[2,9,9,1], index: 1, kind: input, shape index: {}]   ;;  %s2634_s2 = inlined_call_operand.vmem [shape: bf16[2,9,9,1], index: 2, kind: input, shape index: {}]   ;;  %s2635_s3 = inlined_call_operand.vmem [shape: bf16[2,9,9,1], index: 3, kind: input, shape index: {}]   ;;  %s2636_s4 = inlined_call_operand.vmem [shape: bf16[3,3,1,128], index: 4, kind: input, shape index: {}]   ;;  %s2637_s5 = inlined_call_operand.vmem [shape: f32[1,128], index: 5, kind: input, shape index: {}]   ;;  %s2638_s6 = inlined_call_operand.vmem [shape: f32[1,128], index: 6, kind: input, shape index: {}]   ;;  %s2639_s7 = inlined_call_operand.hbm [shape: bf16[2,8,8,128], index: 7, kind: output, shape index: {}]  }
   0x1   :  { %14 = vsyncpa [#allocation3 + $0x1], 0  ;;  %s2075_s24 = smov 0   ;;  %s2077_s25 = smov 0  }
   0x2   :  { %s2079_s26 = smov 0   ;;  %s2081_s27 = smov 0  }
   0x3   :  { %s2083_s28 = smov 0   ;;  %s2085_s29 = smov 0  }
   0x4 LB: > { %s1629_s30 = sadd.s32 4294967295, %s2030_s29   ;;  %s1630_s8 = sadd.s32 4294967294, %s2030_s29   ;;  %s2030_s29 = sphi %s2085_s29, %s20_s29   ;;  %s2026_s28 = sphi %s2083_s28, %s2648_s28   ;;  %s2022_s27 = sphi %s2081_s27, %s2647_s27   ;;  %s2018_s26 = sphi %s2079_s26, %s2646_s26   ;;  %s2014_s25 = sphi %s2077_s25, %s2645_s25   ;;  %s2010_s24 = sphi %s2075_s24, %s2644_s24  }
   0x5   : > { %s32_s9 = sadd.s32 1, %s2026_s28  ;;  %s208_s10 = sadd.s32 1, %s2018_s26 }
   0x6   : > { %p34_p0 = scmp.ge.s32.totalorder %s32_s9, 2  ;;  %p218_p1 = scmp.ne.s32.totalorder %s2018_s26, %s2014_s25 }
   0x7   : > { %p219_p2 = scmp.eq.s32.totalorder %s1629_s30, 1  ;;  %p224_p3 = scmp.ne.s32.totalorder %s2014_s25, %s2010_s24 }
   0x8   : > { %s2650_s9 = smov (%p34_p0, %s32_s9), 0  ;;  %p225_p5 = scmp.eq.s32.totalorder %s1630_s8, 1 }
   0x9   : > { %p2115_p4 = por %p219_p2, %p218_p1  ;;  %s203_s12 = ssub.s32 %s2026_s28, %s2650_s9 }
   0xa   : > { %p1633_p6 = scmp.ge.s32.totalorder %s2030_s29, 1  ;;  %p206_p7 = scmp.eq.s32.totalorder %s203_s12, 0 }
   0xb   : > { %p2122_p8 = por %p225_p5, %p224_p3  ;;  %p284_p9 = scmp.lt.s32.totalorder %s2030_s29, 3 }
   0xc   : > { %s2128_s14 = scalar_select %p206_p7, %s2018_s26, %s208_s10  }
   0xd   : > { %p285_p10 = pnand %p1633_p6, %p284_p9 }
   0xe   : > { %p331_p11 = scmp.lt.s32.totalorder (!%p285_p10), %s2022_s27, 1 }
   0xf   : > { %288 = sbr.rel (%p285_p10) target bundleno = 258 (0x102), region = 48 }
  0x14   : > { %v2032_v0 = vmov 0   ;;  %s332_s15 = scalar_select %p331_p11, %s2022_s27, 1  ;;  %vm525_vm0 = vsmask.f32 3328  ;;  %vm526_vm1 = vsmask.f32 7440 }
  0x15   : > { %1789 = vset.pattern.permute.xlu2 %v2032_v0  ;;  %1778 = vset.pattern.permute.xlu1 %v2032_v0  ;;  %vm2171_vm2 = vmor %vm525_vm0, %vm526_vm1  ;;  %v1639_v58 = vld [vmem:[%s2636_s4 + $0x1] sm:$0x1] }
  0x16   : > { %1767 = vset.pattern.permute.xlu0 %v2032_v0  ;;  %s2132_s16 = smul.u32 72, %s332_s15 }
  0x18   : > { %s2138_s19 = scalar_lea.vmem %s2633_s1, %s2132_s16  ;;  %s2146_s22 = scalar_lea.vmem %s2632_s0, %s2132_s16 }
  0x19   : > { %v433_v1 = vld [vmem:[%s2138_s19] sm:$0xf]  ;;  %v434_v2 = vld [vmem:[%s2138_s19 + $0x8] sm:$0xf]  ;;  %v435_v3 = vld [vmem:[%s2138_s19 + $0x10] sm:$0xf]  ;;  %s2193_s8 = scalar_lea.vmem %s2634_s2, %s2132_s16  ;;  %s2206_s15 = scalar_lea.vmem %s2635_s3, %s2132_s16 }
  0x1a   : > { %v443_v4 = vunpack.c.l.bf16 %v433_v1  ;;  %v444_v5 = vunpack.c.l.bf16 %v434_v2  ;;  %v360_v6 = vld [vmem:[%s2146_s22 + $0x20] sm:$0xf]  ;;  %v361_v7 = vld [vmem:[%s2146_s22 + $0x28] sm:$0xf]  ;;  %v445_v9 = vunpack.c.l.bf16 %v435_v3  ;;  %v436_v14 = vld [vmem:[%s2138_s19 + $0x18] sm:$0xf] }
  0x1b   : > { %v356_v8 = vld [vmem:[%s2146_s22] sm:$0xf]  ;;  %v369_v10 = vunpack.c.l.bf16 %v360_v6  ;;  %v370_v11 = vunpack.c.l.bf16 %v361_v7  ;;  %v357_v12 = vld [vmem:[%s2146_s22 + $0x8] sm:$0xf]  ;;  %v362_v15 = vld [vmem:[%s2146_s22 + $0x30] sm:$0xf]  ;;  %v446_v18 = vunpack.c.l.bf16 %v436_v14 }
  0x1c   : > { %v365_v13 = vunpack.c.l.bf16 %v356_v8  ;;  %v1790_v16 = vpack.i.bf16 %v444_v5, %v443_v4  ;;  %v366_v17 = vunpack.c.l.bf16 %v357_v12  ;;  %v363_v19 = vld [vmem:[%s2146_s22 + $0x38] sm:$0xf]  ;;  %v371_v20 = vunpack.c.l.bf16 %v362_v15  ;;  %v358_v21 = vld [vmem:[%s2146_s22 + $0x10] sm:$0xf]  ;;  %v509_v27 = vld [vmem:[%s2146_s22] sm:$0xf] }
  0x1d   : > { %v359_v22 = vld [vmem:[%s2146_s22 + $0x18] sm:$0xf]  ;;  %v1779_v23 = vpack.i.bf16 %v370_v11, %v369_v10  ;;  %v372_v24 = vunpack.c.l.bf16 %v363_v19  ;;  %v367_v25 = vunpack.c.l.bf16 %v358_v21  ;;  %v510_v28 = vld [vmem:[%s2146_s22 + $0x4] sm:$0x1]  ;;  %v511_v29 = vld [vmem:[%s2146_s22 + $0x8] sm:$0xf]  ;;  %v1795_v31 = vpack.i.bf16 %v446_v18, %v445_v9 }
  0x1e   : > { %v368_v26 = vunpack.c.l.bf16 %v359_v22  ;;  %1791 = vperm.xlu2 %1789, %v1790_v16   ;;  %v1768_v30 = vpack.i.bf16 %v366_v17, %v365_v13  ;;  %v512_v32 = vld [vmem:[%s2146_s22 + $0xc] sm:$0x1]  ;;  %v529_v33 = vshrl.u32 %v509_v27, 16  ;;  %v532_v34 = vshll.u32 %v509_v27, 16  ;;  %v439_v35 = vld [vmem:[%s2138_s19 + $0x30] sm:$0xf] }
  0x1f   : > { %1780 = vperm.xlu1 %1778, %v1779_v23   ;;  %v1784_v36 = vpack.i.bf16 %v372_v24, %v371_v20  ;;  %v538_v38 = vshll.u32 %v510_v28, 16  ;;  %v543_v39 = vshrl.u32 %v511_v29, 16  ;;  %v440_v40 = vld [vmem:[%s2138_s19 + $0x38] sm:$0xf]  ;;  %v437_v41 = vld [vmem:[%s2138_s19 + $0x20] sm:$0xf]  ;;  %v449_v49 = vunpack.c.l.bf16 %v439_v35 }
  0x20   : > { %v1773_v37 = vpack.i.bf16 %v368_v26, %v367_v25  ;;  %1769 = vperm.xlu0 %1767, %v1768_v30   ;;  %v531_v42 = vrot.slane %v529_v33, 4  ;;  %v534_v43 = vrot.slane %v532_v34, 5  ;;  %v546_v44 = vshll.u32 %v511_v29, 16  ;;  %v438_v46 = vld [vmem:[%s2138_s19 + $0x28] sm:$0xf] }
  0x21   : > { %v552_v45 = vshll.u32 %v512_v32, 16  ;;  %v540_v47 = vrot.slane %v538_v38, 5  ;;  %v545_v48 = vrot.slane %v543_v39, 4  ;;  %v450_v50 = vunpack.c.l.bf16 %v440_v40  ;;  %v521_v51 = vld [vmem:[%s2146_s22 + $0x30] sm:$0xf] }
  0x22   : > { %v522_v52 = vld [vmem:[%s2146_s22 + $0x34] sm:$0x1]  ;;  %v535_v53 = vor.u32 %v534_v43, %v531_v42  ;;  %v548_v54 = vrot.slane %v546_v44, 5  ;;  %v447_v56 = vunpack.c.l.bf16 %v437_v41  ;;  %v523_v57 = vld [vmem:[%s2146_s22 + $0x38] sm:$0xf]  ;;  %v448_v60 = vunpack.c.l.bf16 %v438_v46 }
  0x23   : > { %v554_v55 = vrot.slane %v552_v45, 5  ;;  %v1805_v59 = vpack.i.bf16 %v450_v50, %v449_v49  ;;  %v524_v61 = vld [vmem:[%s2146_s22 + $0x3c] sm:$0x1]  ;;  %v613_v62 = vshrl.u32 %v521_v51, 16  ;;  %v616_v63 = vshll.u32 %v521_v51, 16 }
  0x24   : > { %v536_v0 = vrot.slane %v535_v53, 4  ;;  %v549_v1 = vor.u32 %v548_v54, %v545_v48  ;;  %v622_v2 = vshll.u32 %v522_v52, 16  ;;  %v627_v3 = vshrl.u32 %v523_v57, 16  ;;  %v517_v4 = vld [vmem:[%s2146_s22 + $0x20] sm:$0xf] }
  0x25   : > { %v1800_v5 = vpack.i.bf16 %v448_v60, %v447_v56  ;;  %v615_v6 = vrot.slane %v613_v62, 4  ;;  %v618_v7 = vrot.slane %v616_v63, 5  ;;  %v630_v8 = vshll.u32 %v523_v57, 16  ;;  %v518_v9 = vld [vmem:[%s2146_s22 + $0x24] sm:$0x1] }
  0x26   : > { %1796 = vperm.xlu2 %1789, %v1795_v31   ;;  %v541_v10 = vsel %vm2171_vm2, %v536_v0, %v540_v47  ;;  %v550_v11 = vrot.slane %v549_v1, 4  ;;  %v624_v12 = vrot.slane %v622_v2, 5  ;;  %v629_v13 = vrot.slane %v627_v3, 4  ;;  %v519_v18 = vld [vmem:[%s2146_s22 + $0x28] sm:$0xf] }
  0x27   : > { %1785 = vperm.xlu1 %1778, %v1784_v36   ;;  %v650_v14 = vunpack.c.l.bf16 %v541_v10  ;;  %v619_v15 = vor.u32 %v618_v7, %v615_v6  ;;  %v632_v16 = vrot.slane %v630_v8, 5  ;;  %v636_v17 = vshll.u32 %v524_v61, 16  ;;  %v520_v27 = vld [vmem:[%s2146_s22 + $0x2c] sm:$0x1]  ;;  %v513_v32 = vld [vmem:[%s2146_s22 + $0x10] sm:$0xf] }
  0x28   : > { %1774 = vperm.xlu0 %1767, %v1773_v37   ;;  %v555_v19 = vsel %vm2171_vm2, %v550_v11, %v554_v55  ;;  %v585_v20 = vshrl.u32 %v517_v4, 16  ;;  %v588_v21 = vshll.u32 %v517_v4, 16  ;;  %v594_v22 = vshll.u32 %v518_v9, 16  ;;  %v514_v37 = vld [vmem:[%s2146_s22 + $0x14] sm:$0x1] }
  0x29   : > { %v651_v23 = vunpack.c.l.bf16 %v555_v19  ;;  %v620_v24 = vrot.slane %v619_v15, 4  ;;  %v633_v25 = vor.u32 %v632_v16, %v629_v13  ;;  %v638_v26 = vrot.slane %v636_v17, 5  ;;  %v515_v42 = vld [vmem:[%s2146_s22 + $0x18] sm:$0xf]  ;;  %v516_v52 = vld [vmem:[%s2146_s22 + $0x1c] sm:$0x1] }
  0x2a   : > { %v587_v28 = vrot.slane %v585_v20, 4  ;;  %v590_v29 = vrot.slane %v588_v21, 5  ;;  %v596_v30 = vrot.slane %v594_v22, 5  ;;  %v599_v31 = vshrl.u32 %v519_v18, 16  ;;  %v722_v60 = vld [vmem:[%s2193_s8 + $0x20] sm:$0xf] }
  0x2b   : > { %v1810_v33 = vpack.i.bf16 %v651_v23, %v650_v14  ;;  %v625_v34 = vsel %vm2171_vm2, %v620_v24, %v624_v12  ;;  %v634_v35 = vrot.slane %v633_v25, 4  ;;  %v602_v36 = vshll.u32 %v519_v18, 16  ;;  %v723_v61 = vld [vmem:[%s2193_s8 + $0x28] sm:$0xf]  ;;  %v720_v9 = vld [vmem:[%s2193_s8 + $0x10] sm:$0xf] }
  0x2c   : > { %v656_v38 = vunpack.c.l.bf16 %v625_v34  ;;  %v591_v39 = vor.u32 %v590_v29, %v587_v28  ;;  %v601_v40 = vrot.slane %v599_v31, 4  ;;  %v608_v41 = vshll.u32 %v520_v27, 16  ;;  %v721_v13 = vld [vmem:[%s2193_s8 + $0x18] sm:$0xf]  ;;  %v718_v14 = vld [vmem:[%s2193_s8] sm:$0xf] }
  0x2d   : > { %v639_v43 = vsel %vm2171_vm2, %v634_v35, %v638_v26  ;;  %v604_v44 = vrot.slane %v602_v36, 5  ;;  %v557_v45 = vshrl.u32 %v513_v32, 16  ;;  %v560_v46 = vshll.u32 %v513_v32, 16  ;;  %v719_v16 = vld [vmem:[%s2193_s8 + $0x8] sm:$0xf] }
  0x2e   : > { %1811 = vperm.xlu2 %1789, %v1810_v33   ;;  %v657_v47 = vunpack.c.l.bf16 %v639_v43  ;;  %v592_v48 = vrot.slane %v591_v39, 4  ;;  %v610_v49 = vrot.slane %v608_v41, 5  ;;  %v566_v50 = vshll.u32 %v514_v37, 16  ;;  %v798_v17 = vld [vmem:[%s2206_s15 + $0x10] sm:$0xf] }
  0x2f   : > { %1806 = vperm.xlu1 %1778, %v1805_v59   ;;  %v605_v51 = vor.u32 %v604_v44, %v601_v40  ;;  %v559_v53 = vrot.slane %v557_v45, 4  ;;  %v562_v54 = vrot.slane %v560_v46, 5  ;;  %v571_v55 = vshrl.u32 %v515_v42, 16  ;;  %v872_v18 = vld [vmem:[%s2193_s8] sm:$0xf] }
  0x30   : > { %1801 = vperm.xlu0 %1767, %v1800_v5   ;;  %v597_v56 = vsel %vm2171_vm2, %v592_v48, %v596_v30  ;;  %v574_v57 = vshll.u32 %v515_v42, 16  ;;  %v568_v0 = vrot.slane %v566_v50, 5  ;;  %v1825_v1 = vpack.i.bf16 %v657_v47, %v656_v38  ;;  %v799_v22 = vld [vmem:[%s2206_s15 + $0x18] sm:$0xf]  ;;  %v796_v23 = vld [vmem:[%s2206_s15] sm:$0xf] }
  0x31   : > { %v606_v62 = vrot.slane %v605_v51, 4  ;;  %v563_v63 = vor.u32 %v562_v54, %v559_v53  ;;  %v573_v59 = vrot.slane %v571_v55, 4  ;;  %v654_v2 = vunpack.c.l.bf16 %v597_v56  ;;  %v797_v28 = vld [vmem:[%s2206_s15 + $0x8] sm:$0xf]  ;;  %v873_v29 = vld [vmem:[%s2193_s8 + $0x4] sm:$0x1] }
  0x32   : > { %v576_v3 = vrot.slane %v574_v57, 5  ;;  %v580_v4 = vshll.u32 %v516_v52, 16  ;;  %v732_v7 = vunpack.c.l.bf16 %v722_v60  ;;  %v733_v8 = vunpack.c.l.bf16 %v723_v61  ;;  %v874_v30 = vld [vmem:[%s2193_s8 + $0x8] sm:$0xf]  ;;  %v875_v34 = vld [vmem:[%s2193_s8 + $0xc] sm:$0x1] }
  0x33   : > { %v611_v5 = vsel %vm2171_vm2, %v606_v62, %v610_v49  ;;  %v564_v6 = vrot.slane %v563_v63, 4  ;;  %v730_v21 = vunpack.c.l.bf16 %v720_v9  ;;  %v731_v26 = vunpack.c.l.bf16 %v721_v13  ;;  %v724_v39 = vld [vmem:[%s2193_s8 + $0x30] sm:$0xf]  ;;  %v725_v42 = vld [vmem:[%s2193_s8 + $0x38] sm:$0xf] }
  0x34   : > { %v655_v10 = vunpack.c.l.bf16 %v611_v5  ;;  %v577_v11 = vor.u32 %v576_v3, %v573_v59  ;;  %v582_v12 = vrot.slane %v580_v4, 5  ;;  %v1840_v25 = vpack.i.bf16 %v733_v8, %v732_v7  ;;  %v884_v50 = vld [vmem:[%s2193_s8 + $0x30] sm:$0xf]  ;;  %v886_v55 = vld [vmem:[%s2193_s8 + $0x38] sm:$0xf] }
  0x35   : > { %v569_v15 = vsel %vm2171_vm2, %v564_v6, %v568_v0  ;;  %v728_v27 = vunpack.c.l.bf16 %v718_v14  ;;  %v729_v32 = vunpack.c.l.bf16 %v719_v16  ;;  %v808_v33 = vunpack.c.l.bf16 %v798_v17  ;;  %v885_v62 = vld [vmem:[%s2193_s8 + $0x34] sm:$0x1]  ;;  %v2232_v59 = vld [vmem:[%s2206_s15 + $0x30] sm:$0xf]  ;;  %v880_v8 = vld [vmem:[%s2193_s8 + $0x20] sm:$0xf] }
  0x36   : > { %1826 = vperm.xlu2 %1789, %v1825_v1   ;;  %v1820_v19 = vpack.i.bf16 %v655_v10, %v654_v2  ;;  %v578_v20 = vrot.slane %v577_v11, 4  ;;  %v652_v24 = vunpack.c.l.bf16 %v569_v15  ;;  %v889_v35 = vshrl.u32 %v872_v18, 16  ;;  %v887_v1 = vld [vmem:[%s2193_s8 + $0x3c] sm:$0x1]  ;;  %v881_v13 = vld [vmem:[%s2193_s8 + $0x24] sm:$0x1] }
  0x37   : > { %v809_v37 = vunpack.c.l.bf16 %v799_v22  ;;  %v806_v38 = vunpack.c.l.bf16 %v796_v23  ;;  %v892_v40 = vshll.u32 %v872_v18, 16  ;;  %v807_v41 = vunpack.c.l.bf16 %v797_v28  ;;  %v882_v22 = vld [vmem:[%s2193_s8 + $0x28] sm:$0xf] }
  0x38   : > { %1821 = vperm.xlu1 %1778, %v1820_v19   ;;  %v583_v31 = vsel %vm2171_vm2, %v578_v20, %v582_v12  ;;  %v891_v43 = vrot.slane %v889_v35, 4  ;;  %v898_v44 = vshll.u32 %v873_v29, 16  ;;  %v903_v45 = vshrl.u32 %v874_v30, 16 }
  0x39   : > { %v653_v36 = vunpack.c.l.bf16 %v583_v31  ;;  %v894_v47 = vrot.slane %v892_v40, 5  ;;  %v906_v48 = vshll.u32 %v874_v30, 16  ;;  %v912_v49 = vshll.u32 %v875_v34, 16 }
  0x3a   : > { %v1835_v51 = vpack.i.bf16 %v731_v26, %v730_v21  ;;  %v1830_v52 = vpack.i.bf16 %v729_v32, %v728_v27  ;;  %v734_v53 = vunpack.c.l.bf16 %v724_v39  ;;  %v905_v54 = vrot.slane %v903_v45, 4  ;;  %v883_v32 = vld [vmem:[%s2193_s8 + $0x2c] sm:$0x1] }
  0x3b   : > { %v1815_v46 = vpack.i.bf16 %v653_v36, %v652_v24  ;;  %v735_v56 = vunpack.c.l.bf16 %v725_v42  ;;  %v895_v57 = vor.u32 %v894_v47, %v891_v43  ;;  %v900_v60 = vrot.slane %v898_v44, 5  ;;  %v803_v24 = vld [vmem:[%s2206_s15 + $0x38] sm:$0xf]  ;;  %v877_v42 = vld [vmem:[%s2193_s8 + $0x14] sm:$0x1] }
  0x3c   : > { %v908_v61 = vrot.slane %v906_v48, 5  ;;  %v1855_v63 = vpack.i.bf16 %v809_v37, %v808_v33  ;;  %v1850_v0 = vpack.i.bf16 %v807_v41, %v806_v38  ;;  %v973_v2 = vshrl.u32 %v884_v50, 16  ;;  %v876_v37 = vld [vmem:[%s2193_s8 + $0x10] sm:$0xf]  ;;  %v878_v47 = vld [vmem:[%s2193_s8 + $0x18] sm:$0xf] }
  0x3d   : > { %1816 = vperm.xlu0 %1767, %v1815_v46   ;;  %v976_v3 = vshll.u32 %v884_v50, 16  ;;  %v896_v4 = vrot.slane %v895_v57, 4  ;;  %v914_v6 = vrot.slane %v912_v49, 5  ;;  %v987_v7 = vshrl.u32 %v886_v55, 16  ;;  %v800_v49 = vld [vmem:[%s2206_s15 + $0x20] sm:$0xf] }
  0x3e   : > { %1841 = vperm.xlu2 %1789, %v1840_v25   ;;  %v909_v5 = vor.u32 %v908_v61, %v905_v54  ;;  %v975_v9 = vrot.slane %v973_v2, 4  ;;  %v982_v11 = vshll.u32 %v885_v62, 16  ;;  %v990_v12 = vshll.u32 %v886_v55, 16  ;;  %v879_v61 = vld [vmem:[%s2193_s8 + $0x1c] sm:$0x1]  ;;  %s328_s8 = sand.u32 1, %s2014_s25  }
  0x3f   : > { %v978_v10 = vrot.slane %v976_v3, 5  ;;  %v1845_v14 = vpack.i.bf16 %v735_v56, %v734_v53  ;;  %v901_v15 = vsel %vm2171_vm2, %v896_v4, %v900_v60  ;;  %v989_v17 = vrot.slane %v987_v7, 4  ;;  %v801_v53 = vld [vmem:[%s2206_s15 + $0x28] sm:$0xf]  ;;  %s1634_s10 = sshll.u32 %s328_s8, 5  ;;  %s1684_s15 = sshll.u32 %s2022_s27, 5 }
  0x40   : > { %1836 = vperm.xlu1 %1778, %v1835_v51   ;;  %v910_v16 = vrot.slane %v909_v5, 4  ;;  %v812_v18 = vunpack.c.l.bf16 %v2232_v59  ;;  %v992_v20 = vrot.slane %v990_v12, 5  ;;  %v996_v21 = vshll.u32 %v887_v1, 16  ;;  %s2563_s12 = scalar_lea.vmem [#allocation2], %s1634_s10  ;;  %s1500_s18 = scalar_lea.hbm %s2639_s7, %s1684_s15 }
  0x41   : > { %v979_v19 = vor.u32 %v978_v10, %v975_v9  ;;  %v945_v25 = vshrl.u32 %v880_v8, 16  ;;  %v948_v26 = vshll.u32 %v880_v8, 16  ;;  %v954_v27 = vshll.u32 %v881_v13, 16  ;;  %s1501_s27 = sshll.u32 %s2563_s12, 4  ;;  %s1487_s20 = scalar_lea.sflag [#allocation3], %s328_s8  ;;  %s1502_s27 = int_to_ptr.vmem [resolvable:$true] %s1501_s27 }
  0x42   : > { %v915_v23 = vsel %vm2171_vm2, %v910_v16, %v914_v6  ;;  %v1010_v28 = vunpack.c.l.bf16 %v901_v15  ;;  %v984_v30 = vrot.slane %v982_v11, 5  ;;  %v993_v31 = vor.u32 %v992_v20, %v989_v17  ;;  %v1648_v20 = vld [vmem:[%s2146_s22 + $0x28] sm:$0xf]  ;;  %s1972_s10 = scalar_lea.hbm %s2639_s7, 64 }
  0x43   : > { %v1011_v29 = vunpack.c.l.bf16 %v915_v23  ;;  %v980_v33 = vrot.slane %v979_v19, 4  ;;  %v947_v34 = vrot.slane %v945_v25, 4  ;;  %v950_v35 = vrot.slane %v948_v26, 5 }
  0x44   : > { %v959_v36 = vshrl.u32 %v882_v22, 16  ;;  %v813_v38 = vunpack.c.l.bf16 %v803_v24  ;;  %v998_v39 = vrot.slane %v996_v21, 5  ;;  %v956_v40 = vrot.slane %v954_v27, 5  ;;  %v1649_v21 = vld [vmem:[%s2146_s22 + $0x30] sm:$0xf] }
  0x45   : > { %1831 = vperm.xlu0 %1767, %v1830_v52   ;;  %v962_v41 = vshll.u32 %v882_v22, 16  ;;  %v994_v43 = vrot.slane %v993_v31, 4  ;;  %v951_v44 = vor.u32 %v950_v35, %v947_v34  ;;  %v968_v46 = vshll.u32 %v883_v32, 16  ;;  %v1662_v22 = vld [vmem:[%s2146_s22 + $0x8] sm:$0xf] }
  0x46   : > { %1856 = vperm.xlu2 %1789, %v1855_v63   ;;  %v961_v45 = vrot.slane %v959_v36, 4  ;;  %v1870_v48 = vpack.i.bf16 %v1011_v29, %v1010_v28  ;;  %v917_v51 = vshrl.u32 %v876_v37, 16  ;;  %v920_v52 = vshll.u32 %v876_v37, 16  ;;  %v1664_v27 = vld [vmem:[%s2146_s22 + $0x10] sm:$0xf] }
  0x47   : > { %v964_v50 = vrot.slane %v962_v41, 5  ;;  %v985_v54 = vsel %vm2171_vm2, %v980_v33, %v984_v30  ;;  %v952_v55 = vrot.slane %v951_v44, 4  ;;  %v970_v56 = vrot.slane %v968_v46, 5  ;;  %v1646_v31 = vld [vmem:[%s2146_s22 + $0x18] sm:$0xf] }
  0x48   : > { %1851 = vperm.xlu1 %1778, %v1850_v0   ;;  %v926_v57 = vshll.u32 %v877_v42, 16  ;;  %v919_v62 = vrot.slane %v917_v51, 4  ;;  %v922_v63 = vrot.slane %v920_v52, 5  ;;  %v931_v59 = vshrl.u32 %v878_v47, 16  ;;  %v1647_v32 = vld [vmem:[%s2146_s22 + $0x20] sm:$0xf] }
  0x49   : > { %v965_v60 = vor.u32 %v964_v50, %v961_v45  ;;  %v1865_v1 = vpack.i.bf16 %v813_v38, %v812_v18  ;;  %v810_v2 = vunpack.c.l.bf16 %v800_v49  ;;  %v999_v0 = vsel %vm2171_vm2, %v994_v43, %v998_v39  ;;  %v1663_v35 = vld [vmem:[%s2146_s22 + $0xc] sm:$0x1]  ;;  %v1644_v39 = vld [vmem:[%s2146_s22 + $0x8] sm:$0xf]  ;;  %v1665_v45 = vld [vmem:[%s2146_s22 + $0x14] sm:$0x1] }
  0x4a   : > { %v934_v3 = vshll.u32 %v878_v47, 16  ;;  %v811_v4 = vunpack.c.l.bf16 %v801_v53  ;;  %v923_v6 = vor.u32 %v922_v63, %v919_v62  ;;  %v933_v7 = vrot.slane %v931_v59, 4  ;;  %v1655_v50 = vld [vmem:[%s2138_s19 + $0x18] sm:$0xf]  ;;  %v1676_v53 = vld [vmem:[%s2146_s22 + $0x40] sm:$0xf] }
  0x4b   : > { %v966_v5 = vrot.slane %v965_v60, 4  ;;  %v1016_v8 = vunpack.c.l.bf16 %v985_v54  ;;  %v957_v9 = vsel %vm2171_vm2, %v952_v55, %v956_v40  ;;  %v940_v11 = vshll.u32 %v879_v61, 16  ;;  %v1645_v40 = vld [vmem:[%s2146_s22 + $0x10] sm:$0xf] }
  0x4c   : > { %v936_v10 = vrot.slane %v934_v3, 5  ;;  %v1017_v12 = vunpack.c.l.bf16 %v999_v0  ;;  %v924_v15 = vrot.slane %v923_v6, 4  ;;  %v928_v16 = vrot.slane %v926_v57, 5  ;;  %v1653_v57 = vld [vmem:[%s2138_s19 + $0x8] sm:$0xf] }
  0x4d   : > { %1846 = vperm.xlu0 %1767, %v1845_v14   ;;  %v971_v13 = vsel %vm2171_vm2, %v966_v5, %v970_v56  ;;  %v942_v18 = vrot.slane %v940_v11, 5  ;;  %v1014_v14 = vunpack.c.l.bf16 %v957_v9  ;;  %v1860_v23 = vpack.i.bf16 %v811_v4, %v810_v2  ;;  %v1656_v56 = vld [vmem:[%s2138_s19 + $0x20] sm:$0xf]  ;;  %v1654_v63 = vld [vmem:[%s2138_s19 + $0x10] sm:$0xf] }
  0x4e   : > { %1871 = vperm.xlu2 %1789, %v1870_v48   ;;  %v937_v17 = vor.u32 %v936_v10, %v933_v7  ;;  %v1015_v19 = vunpack.c.l.bf16 %v971_v13  ;;  %v1885_v25 = vpack.i.bf16 %v1017_v12, %v1016_v8  ;;  %v929_v26 = vsel %vm2171_vm2, %v924_v15, %v928_v16  ;;  %v1674_v48 = vld [vmem:[%s2146_s22 + $0x38] sm:$0xf]  ;;  %v2283_v5 = vld [vmem:[%s2146_s22 + $0x40] sm:$0xf]  ;;  %v1670_v8 = vld [vmem:[%s2146_s22 + $0x28] sm:$0xf] }
  0x4f   : > { %v1094_v29 = vunpack.c.l.bf16 %v1648_v20  ;;  %v1095_v30 = vunpack.c.l.bf16 %v1649_v21  ;;  %v1251_v33 = vshrl.u32 %v1662_v22, 16  ;;  %v1254_v36 = vshll.u32 %v1662_v22, 16  ;;  %v2280_v4 = vld [vmem:[%s2146_s22 + $0x38] sm:$0xf]  ;;  %v1675_v12 = vld [vmem:[%s2146_s22 + $0x3c] sm:$0x1] }
  0x50   : > { %1866 = vperm.xlu1 %1778, %v1865_v1   ;;  %v938_v24 = vrot.slane %v937_v17, 4  ;;  %v1880_v34 = vpack.i.bf16 %v1015_v19, %v1014_v14  ;;  %v1012_v37 = vunpack.c.l.bf16 %v929_v26  ;;  %v1265_v42 = vshrl.u32 %v1664_v27, 16  ;;  %v1672_v14 = vld [vmem:[%s2146_s22 + $0x30] sm:$0xf]  ;;  %v1677_v22 = vld [vmem:[%s2146_s22 + $0x44] sm:$0x1] }
  0x51   : > { %v1253_v41 = vrot.slane %v1251_v33, 4  ;;  %v1092_v43 = vunpack.c.l.bf16 %v1646_v31  ;;  %v1093_v44 = vunpack.c.l.bf16 %v1647_v32  ;;  %v1256_v46 = vrot.slane %v1254_v36, 5 }
  0x52   : > { %v943_v28 = vsel %vm2171_vm2, %v938_v24, %v942_v18  ;;  %v1268_v47 = vshll.u32 %v1664_v27, 16  ;;  %v1900_v49 = vpack.i.bf16 %v1095_v30, %v1094_v29  ;;  %v1260_v51 = vshll.u32 %v1663_v35, 16  ;;  %v1671_v35 = vld [vmem:[%s2146_s22 + $0x2c] sm:$0x1] }
  0x53   : > { %v1013_v38 = vunpack.c.l.bf16 %v943_v28  ;;  %v1267_v52 = vrot.slane %v1265_v42, 4  ;;  %v1090_v54 = vunpack.c.l.bf16 %v1644_v39  ;;  %v1091_v55 = vunpack.c.l.bf16 %v1645_v40 }
  0x54   : > { %v1257_v60 = vor.u32 %v1256_v46, %v1253_v41  ;;  %v1270_v61 = vrot.slane %v1268_v47, 5  ;;  %v1274_v59 = vshll.u32 %v1665_v45, 16  ;;  %v1335_v1 = vshrl.u32 %v1674_v48, 16  ;;  %v1673_v45 = vld [vmem:[%s2146_s22 + $0x34] sm:$0x1] }
  0x55   : > { %1861 = vperm.xlu0 %1767, %v1860_v23   ;;  %v1875_v62 = vpack.i.bf16 %v1013_v38, %v1012_v37  ;;  %v1338_v2 = vshll.u32 %v1674_v48, 16  ;;  %v1895_v0 = vpack.i.bf16 %v1093_v44, %v1092_v43  ;;  %v1170_v3 = vunpack.c.l.bf16 %v1655_v50  ;;  %v1666_v37 = vld [vmem:[%s2146_s22 + $0x18] sm:$0xf]  ;;  %v1668_v47 = vld [vmem:[%s2146_s22 + $0x20] sm:$0xf] }
  0x56   : > { %1886 = vperm.xlu2 %1789, %v1885_v25   ;;  %v1271_v6 = vor.u32 %v1270_v61, %v1267_v52  ;;  %v1349_v7 = vshrl.u32 %v1676_v53, 16  ;;  %v1171_v9 = vunpack.c.l.bf16 %v1656_v56  ;;  %v1258_v10 = vrot.slane %v1257_v60, 4  ;;  %v1659_v48 = vld [vmem:[%s2138_s19 + $0x38] sm:$0xf] }
  0x57   : > { %v1262_v11 = vrot.slane %v1260_v51, 5  ;;  %v1352_v13 = vshll.u32 %v1676_v53, 16  ;;  %v1890_v15 = vpack.i.bf16 %v1091_v55, %v1090_v54  ;;  %v1337_v16 = vrot.slane %v1335_v1, 4  ;;  %v1660_v54 = vld [vmem:[%s2138_s19 + $0x40] sm:$0xf] }
  0x58   : > { %1881 = vperm.xlu1 %1778, %v1880_v34   ;;  %v1340_v17 = vrot.slane %v1338_v2, 5  ;;  %v1351_v18 = vrot.slane %v1349_v7, 4  ;;  %v1168_v19 = vunpack.c.l.bf16 %v1653_v57  ;;  %v1272_v20 = vrot.slane %v1271_v6, 4  ;;  %v1669_v6 = vld [vmem:[%s2146_s22 + $0x24] sm:$0x1] }
  0x59   : > { %v1276_v21 = vrot.slane %v1274_v59, 5  ;;  %v1354_v23 = vrot.slane %v1352_v13, 5  ;;  %v1169_v24 = vunpack.c.l.bf16 %v1654_v63  ;;  %v1344_v25 = vshll.u32 %v1675_v12, 16  ;;  %v1658_v13 = vld [vmem:[%s2138_s19 + $0x30] sm:$0xf] }
  0x5a   : > { %v1307_v26 = vshrl.u32 %v1670_v8, 16  ;;  %v1310_v27 = vshll.u32 %v1670_v8, 16  ;;  %v1915_v28 = vpack.i.bf16 %v1171_v9, %v1170_v3  ;;  %v1096_v29 = vunpack.c.l.bf16 %v2280_v4  ;;  %v1657_v9 = vld [vmem:[%s2138_s19 + $0x28] sm:$0xf]  ;;  %s1503_s19 = sshll.u32 %s1500_s18, 4  ;;  %s1504_s19 = int_to_ptr.hbm [resolvable:$true] %s1503_s19 }
  0x5b   : > { %v1097_v30 = vunpack.c.l.bf16 %v2283_v5  ;;  %v1263_v31 = vsel %vm2171_vm2, %v1258_v10, %v1262_v11  ;;  %v1341_v32 = vor.u32 %v1340_v17, %v1337_v16  ;;  %v1355_v33 = vor.u32 %v1354_v23, %v1351_v18  ;;  %v1667_v5 = vld [vmem:[%s2146_s22 + $0x1c] sm:$0x1]  ;;  %s1966_s21 = sshra.s32 %s1504_s19, 4  ;;  %s1967_s21 = int_to_ptr.hbm [resolvable:$true] %s1966_s21 }
  0x5c   : > { %v1358_v34 = vshll.u32 %v1677_v22, 16  ;;  %v1321_v36 = vshrl.u32 %v1672_v14, 16  ;;  %v1277_v38 = vsel %vm2171_vm2, %v1272_v20, %v1276_v21  ;;  %v1309_v39 = vrot.slane %v1307_v26, 4  ;;  %s1968_s22 = scalar_lea.hbm %s1967_s21, 32  ;;  %p1973_p1 = scmp.lt.s32.totalorder %s1967_s21, %s2639_s7 }
  0x5d   : > { %1876 = vperm.xlu0 %1767, %v1875_v62   ;;  %v1312_v40 = vrot.slane %v1310_v27, 5  ;;  %v1324_v41 = vshll.u32 %v1672_v14, 16  ;;  %v1910_v42 = vpack.i.bf16 %v1169_v24, %v1168_v19  ;;  %v1372_v43 = vunpack.c.l.bf16 %v1263_v31  ;;  %p1969_p12 = scmp.ne.s32.totalorder %s1967_s21, %s1968_s22  ;;  %p1974_p2 = scmp.lt.s32.totalorder %s1972_s10, %s1968_s22 }
  0x5e   : > { %1901 = vperm.xlu2 %1789, %v1900_v49   ;;  %v1346_v44 = vrot.slane %v1344_v25, 5  ;;  %v1323_v46 = vrot.slane %v1321_v36, 4  ;;  %v1316_v49 = vshll.u32 %v1671_v35, 16  ;;  %v1279_v51 = vshrl.u32 %v1666_v37, 16 }
  0x5f   : > { %v1326_v50 = vrot.slane %v1324_v41, 5  ;;  %v1282_v52 = vshll.u32 %v1666_v37, 16  ;;  %v1373_v53 = vunpack.c.l.bf16 %v1277_v38  ;;  %v1342_v55 = vrot.slane %v1341_v32, 4  ;;  %p1970_p13 = pnand %p1969_p12, %p2115_p4  ;;  %p1975_p3 = por %p1974_p2, %p1973_p1 }
  0x60   : > { %1896 = vperm.xlu1 %1778, %v1895_v0   ;;  %v1356_v56 = vrot.slane %v1355_v33, 4  ;;  %v1360_v57 = vrot.slane %v1358_v34, 5  ;;  %v1313_v60 = vor.u32 %v1312_v40, %v1309_v39  ;;  %v1330_v62 = vshll.u32 %v1673_v45, 16 }
  0x61   : > { %v1327_v61 = vor.u32 %v1326_v50, %v1323_v46  ;;  %v1293_v63 = vshrl.u32 %v1668_v47, 16  ;;  %v1281_v59 = vrot.slane %v1279_v51, 4  ;;  %v1284_v1 = vrot.slane %v1282_v52, 5  ;;  %p1971_p0 = pneg %p1970_p13 }
  0x62   : > { %v1296_v2 = vshll.u32 %v1668_v47, 16  ;;  %v1905_v0 = vpack.i.bf16 %v1097_v30, %v1096_v29  ;;  %v1174_v3 = vunpack.c.l.bf16 %v1659_v48  ;;  %v1175_v4 = vunpack.c.l.bf16 %v1660_v54 }
  0x63   : > { %v1295_v7 = vrot.slane %v1293_v63, 4  ;;  %v1930_v8 = vpack.i.bf16 %v1373_v53, %v1372_v43  ;;  %v1347_v10 = vsel %vm2171_vm2, %v1342_v55, %v1346_v44  ;;  %v1318_v11 = vrot.slane %v1316_v49, 5  ;;  %v364_v49 = vld [vmem:[%s2636_s4] sm:$0x1]  ;;  %p1976_p5 = pnand %p1975_p3, %p1971_p0 }
  0x64   : > { %v1298_v12 = vrot.slane %v1296_v2, 5  ;;  %v1314_v16 = vrot.slane %v1313_v60, 4  ;;  %v1328_v17 = vrot.slane %v1327_v61, 4  ;;  %v1332_v18 = vrot.slane %v1330_v62, 5 }
  0x65   : > { %1891 = vperm.xlu0 %1767, %v1890_v15   ;;  %v1361_v15 = vsel %vm2171_vm2, %v1356_v56, %v1360_v57  ;;  %v1285_v14 = vor.u32 %v1284_v1, %v1281_v59  ;;  %v1288_v19 = vshll.u32 %v1667_v5, 16  ;;  %v1302_v21 = vshll.u32 %v1669_v6, 16 }
  0x66   : > { %1916 = vperm.xlu2 %1789, %v1915_v28   ;;  %v1299_v20 = vor.u32 %v1298_v12, %v1295_v7  ;;  %v1925_v22 = vpack.i.bf16 %v1175_v4, %v1174_v3  ;;  %v1172_v23 = vunpack.c.l.bf16 %v1657_v9  ;;  %v1173_v24 = vunpack.c.l.bf16 %v1658_v13  ;;  %v1641_v12 = vld [vmem:[%s2636_s4 + $0x3] sm:$0x1] }
  0x67   : > { %v1378_v25 = vunpack.c.l.bf16 %v1347_v10  ;;  %v1379_v26 = vunpack.c.l.bf16 %v1361_v15  ;;  %v1319_v27 = vsel %vm2171_vm2, %v1314_v16, %v1318_v11  ;;  %v1333_v28 = vsel %vm2171_vm2, %v1328_v17, %v1332_v18  ;;  %v1640_v11 = vld [vmem:[%s2636_s4 + $0x2] sm:$0x1]  ;;  %v1642_v15 = vld [vmem:[%s2636_s4 + $0x4] sm:$0x1]  ;;  %v1643_v16 = vld [vmem:[%s2636_s4 + $0x5] sm:$0x1] }
  0x68   : > { %1911 = vperm.xlu1 %1778, %v1910_v42   ;;  %v1286_v29 = vrot.slane %v1285_v14, 4  ;;  %v1290_v30 = vrot.slane %v1288_v19, 5  ;;  %v1300_v31 = vrot.slane %v1299_v20, 4  ;;  %v1304_v32 = vrot.slane %v1302_v21, 5 }
  0x69   : > { %v1376_v33 = vunpack.c.l.bf16 %v1319_v27  ;;  %v1377_v34 = vunpack.c.l.bf16 %v1333_v28  ;;  %v1920_v35 = vpack.i.bf16 %v1173_v24, %v1172_v23  ;;  %v1945_v36 = vpack.i.bf16 %v1379_v26, %v1378_v25 }
  0x6a   : > { %v1291_v37 = vsel %vm2171_vm2, %v1286_v29, %v1290_v30  ;;  %v1305_v38 = vsel %vm2171_vm2, %v1300_v31, %v1304_v32  ;;  %v451_v50 = vunpack.c.l.bf16 %v1639_v58  ;;  %v373_v51 = vunpack.c.l.bf16 %v364_v49 }
  0x6b   : > { %v1940_v39 = vpack.i.bf16 %v1377_v34, %v1376_v33  ;;  %v1374_v40 = vunpack.c.l.bf16 %v1291_v37  ;;  %v1375_v41 = vunpack.c.l.bf16 %v1305_v38  ;;  %v658_v13 = vunpack.c.l.bf16 %v1640_v11 }
  0x6c   : > { %v2327_v52 = vperm.slane %v451_v50, 0  ;;  %v2333_v60 = vperm.slane %v373_v51, 0  ;;  %v814_v23 = vunpack.c.l.bf16 %v1642_v15  ;;  %v1018_v24 = vunpack.c.l.bf16 %v1643_v16 }
  0x6d   : > { %1906 = vperm.xlu0 %1767, %v1905_v0   ;;  %v1935_v43 = vpack.i.bf16 %v1375_v41, %v1374_v40  ;;  %v2373_v26 = vperm.slane %v658_v13, 0 }
  0x6e   : > { %1931 = vperm.xlu2 %1789, %v1930_v8   ;;  %v2384_v37 = vperm.slane %v814_v23, 0  ;;  %v2386_v38 = vperm.slane %v1018_v24, 0 }
  0x70   : > { %1926 = vperm.xlu1 %1778, %v1925_v22   ;;  %v736_v22 = vunpack.c.l.bf16 %v1641_v12 }
  0x72   : > { %v2380_v34 = vperm.slane %v736_v22, 0 }
  0x75   : > { %1921 = vperm.xlu0 %1767, %v1920_v35  }
  0x76   : > { %1946 = vperm.xlu2 %1789, %v1945_v36  }
  0x78   : > { %1941 = vperm.xlu1 %1778, %v1940_v39   ;;  %v1792_v42 = vpop.permute.xlu2 %1791 }
  0x79   : > { %v1794_v14 = vunpack.i.h.bf16 %v1792_v42  ;;  %v1793_v19 = vunpack.i.l.bf16 %v1792_v42 }
  0x7b   : > { %v494_v30 = vmul.f32 %v1794_v14, %v2327_v52  ;;  %v493_v31 = vmul.f32 %v1793_v19, %v2327_v52 }
  0x7d   : > { %1936 = vperm.xlu0 %1767, %v1935_v43  }
  0x80   : > { %v1797_v44 = vpop.permute.xlu2 %1796 }
  0x81   : > { %v1799_v53 = vunpack.i.h.bf16 %v1797_v44  ;;  %v1798_v54 = vunpack.i.l.bf16 %v1797_v44 }
  0x83   : > { %v496_v63 = vmul.f32 %v1799_v53, %v2327_v52  ;;  %v495_v59 = vmul.f32 %v1798_v54, %v2327_v52 }
  0x88   : > { %v1812_v45 = vpop.permute.xlu2 %1811 }
  0x89   : > { %v1814_v27 = vunpack.i.h.bf16 %v1812_v45  ;;  %v1813_v28 = vunpack.i.l.bf16 %v1812_v45 }
  0x8b   : > { %v701_v39 = vmul.f32 %v1814_v27, %v2373_v26  ;;  %v700_v40 = vmul.f32 %v1813_v28, %v2373_v26 }
  0x90   : > { %v2317_v46 = vpop.permute.xlu2 %1826 }
  0x91   : > { %v2319_v47 = vpop.permute.xlu1 %1780  ;;  %v1829_v29 = vunpack.i.h.bf16 %v2317_v46  ;;  %v1828_v35 = vunpack.i.l.bf16 %v2317_v46 }
  0x92   : > { %v1770_v48 = vpop.permute.xlu0 %1769  ;;  %v1783_v36 = vunpack.i.h.bf16 %v2319_v47  ;;  %v1782_v42 = vunpack.i.l.bf16 %v2319_v47 }
  0x93   : > { %v1772_v20 = vunpack.i.h.bf16 %v1770_v48  ;;  %v1771_v21 = vunpack.i.l.bf16 %v1770_v48  ;;  %v707_v41 = vmul.f32 %v1829_v29, %v2373_v26  ;;  %v1652_v48 = vld [vmem:[%s2636_s4 + $0x6] sm:$0x1]  ;;  %v706_v47 = vmul.f32 %v1828_v35, %v2373_v26 }
  0x95   : > { %v416_v32 = vmul.f32 %v1772_v20, %v2333_v60  ;;  %v415_v33 = vmul.f32 %v1771_v21, %v2333_v60 }
  0x97   : > { %v502_v44 = vadd.f32 %v494_v30, %v416_v32  ;;  %v501_v45 = vadd.f32 %v493_v31, %v415_v33 }
  0x98   : > { %v2329_v55 = vpop.permute.xlu2 %1841 }
  0x99   : > { %v2331_v56 = vpop.permute.xlu1 %1785  ;;  %v1844_v49 = vunpack.i.h.bf16 %v2329_v55  ;;  %v1843_v50 = vunpack.i.l.bf16 %v2329_v55  ;;  %v2414_v11 = vadd.f32 %v700_v40, %v501_v45  ;;  %v2416_v12 = vadd.f32 %v701_v39, %v502_v44 }
  0x9a   : > { %v1775_v57 = vpop.permute.xlu0 %1774 }
  0x9b   : > { %v1777_v61 = vunpack.i.h.bf16 %v1775_v57  ;;  %v1776_v62 = vunpack.i.l.bf16 %v1775_v57  ;;  %v420_v57 = vmul.f32 %v1783_v36, %v2333_v60  ;;  %v2422_v13 = vmul.f32 %v1844_v49, %v2380_v34 }
  0x9c   : > { %v2425_v15 = vmul.f32 %v1843_v50, %v2380_v34 }
  0x9d   : > { %v418_v1 = vmul.f32 %v1777_v61, %v2333_v60  ;;  %v417_v2 = vmul.f32 %v1776_v62, %v2333_v60  ;;  %v1788_v61 = vunpack.i.h.bf16 %v2331_v56  ;;  %v1787_v62 = vunpack.i.l.bf16 %v2331_v56  ;;  %v1661_v56 = vld [vmem:[%s2636_s4 + $0x7] sm:$0x1] }
  0x9e   : > { %v1176_v27 = vunpack.c.l.bf16 %v1661_v56 }
  0x9f   : > { %v2339_v0 = vadd.f32 %v496_v63, %v418_v1  ;;  %v2341_v3 = vadd.f32 %v495_v59, %v417_v2  ;;  %v419_v59 = vmul.f32 %v1782_v42, %v2333_v60  ;;  %v1098_v2 = vunpack.c.l.bf16 %v1652_v48 }
  0xa0   : > { %v2343_v5 = vpop.permute.xlu2 %1856  ;;  %v422_v14 = vmul.f32 %v1788_v61, %v2333_v60  ;;  %v421_v19 = vmul.f32 %v1787_v62, %v2333_v60 }
  0xa1   : > { %v1807_v4 = vpop.permute.xlu1 %1806  ;;  %v1859_v55 = vunpack.i.h.bf16 %v2343_v5  ;;  %v1858_v1 = vunpack.i.l.bf16 %v2343_v5  ;;  %v2439_v24 = vperm.slane %v1098_v2, 0 }
  0xa2   : > { %v2345_v6 = vpop.permute.xlu0 %1801  ;;  %v1809_v58 = vunpack.i.h.bf16 %v1807_v4  ;;  %v1808_v46 = vunpack.i.l.bf16 %v1807_v4 }
  0xa3   : > { %v1804_v51 = vunpack.i.h.bf16 %v2345_v6  ;;  %v1803_v53 = vunpack.i.l.bf16 %v2345_v6  ;;  %v2434_v22 = vmul.f32 %v1859_v55, %v2384_v37  ;;  %v2437_v23 = vmul.f32 %v1858_v1, %v2384_v37 }
  0xa4   : > { %v500_v4 = vmul.f32 %v1809_v58, %v2327_v52  ;;  %v499_v6 = vmul.f32 %v1808_v46, %v2327_v52  ;;  %v2458_v58 = vperm.slane %v1176_v27, 0 }
  0xa5   : > { %v498_v5 = vmul.f32 %v1804_v51, %v2327_v52  ;;  %v497_v16 = vmul.f32 %v1803_v53, %v2327_v52 }
  0xa6   : > { %v507_v52 = vadd.f32 %v499_v6, %v421_v19  ;;  %v508_v29 = vadd.f32 %v500_v4, %v422_v14 }
  0xa7   : > { %v506_v31 = vadd.f32 %v498_v5, %v420_v57  ;;  %v505_v32 = vadd.f32 %v497_v16, %v419_v59 }
  0xa8   : > { %v2349_v8 = vpop.permute.xlu2 %1871  ;;  %v714_v50 = vadd.f32 %v706_v47, %v507_v52  ;;  %v715_v51 = vadd.f32 %v707_v41, %v508_v29 }
  0xa9   : > { %v1874_v33 = vunpack.i.h.bf16 %v2349_v8  ;;  %v1873_v35 = vunpack.i.l.bf16 %v2349_v8 }
  0xaa   : > { %v2347_v7 = vpop.permute.xlu1 %1821 }
  0xab   : > { %v1824_v20 = vunpack.i.h.bf16 %v2347_v7  ;;  %v1823_v21 = vunpack.i.l.bf16 %v2347_v7  ;;  %v1678_v7 = vld [vmem:[%s2636_s4 + $0x8] sm:$0x1]  ;;  %v1061_v53 = vmul.f32 %v1874_v33, %v2386_v38 }
  0xac   : > { %v1380_v48 = vunpack.c.l.bf16 %v1678_v7 }
  0xad   : > { %v705_v36 = vmul.f32 %v1824_v20, %v2373_v26  ;;  %v704_v39 = vmul.f32 %v1823_v21, %v2373_v26 }
  0xae   : > { %v2473_v47 = vperm.slane %v1380_v48, 0 }
  0xaf   : > { %v2351_v9 = vpop.permute.xlu0 %1816  ;;  %v713_v62 = vadd.f32 %v705_v36, %v506_v31 }
  0xb0   : > { %v2367_v17 = vpop.permute.xlu2 %1886  ;;  %v1819_v30 = vunpack.i.h.bf16 %v2351_v9  ;;  %v1818_v60 = vunpack.i.l.bf16 %v2351_v9 }
  0xb1   : > { %v1889_v6 = vunpack.i.h.bf16 %v2367_v17  ;;  %v1888_v56 = vunpack.i.l.bf16 %v2367_v17  ;;  %v791_v31 = vadd.f32 %v2422_v13, %v713_v62 }
  0xb2   : > { %v2353_v10 = vpop.permute.xlu1 %1836  ;;  %v703_v8 = vmul.f32 %v1819_v30, %v2373_v26  ;;  %v702_v49 = vmul.f32 %v1818_v60, %v2373_v26 }
  0xb3   : > { %v1839_v40 = vunpack.i.h.bf16 %v2353_v10  ;;  %v1838_v42 = vunpack.i.l.bf16 %v2353_v10  ;;  %v1060_v10 = vmul.f32 %v1873_v35, %v2386_v38  ;;  %v1066_v60 = vmul.f32 %v1888_v56, %v2386_v38 }
  0xb4   : > { %v710_v4 = vadd.f32 %v702_v49, %v2341_v3 }
  0xb5   : > { %v781_v59 = vmul.f32 %v1839_v40, %v2380_v34  ;;  %v780_v55 = vmul.f32 %v1838_v42, %v2380_v34 }
  0xb7   : > { %v2369_v18 = vpop.permute.xlu0 %1831  ;;  %v788_v20 = vadd.f32 %v780_v55, %v710_v4 }
  0xb8   : > { %v2401_v54 = vpop.permute.xlu2 %1901  ;;  %v1834_v9 = vunpack.i.h.bf16 %v2369_v18  ;;  %v1833_v45 = vunpack.i.l.bf16 %v2369_v18  ;;  %v712_v18 = vadd.f32 %v704_v39, %v505_v32 }
  0xb9   : > { %v1904_v27 = vunpack.i.h.bf16 %v2401_v54  ;;  %v1903_v3 = vunpack.i.l.bf16 %v2401_v54  ;;  %v2504_v36 = vadd.f32 %v2437_v23, %v788_v20 }
  0xba   : > { %v2371_v25 = vpop.permute.xlu1 %1851  ;;  %v779_v1 = vmul.f32 %v1834_v9, %v2380_v34  ;;  %v778_v26 = vmul.f32 %v1833_v45, %v2380_v34  ;;  %v790_v7 = vadd.f32 %v2425_v15, %v712_v18 }
  0xbb   : > { %v1854_v57 = vunpack.i.h.bf16 %v2371_v25  ;;  %v1853_v61 = vunpack.i.l.bf16 %v2371_v25  ;;  %v711_v25 = vadd.f32 %v703_v8, %v2339_v0  ;;  %v2510_v13 = vmul.f32 %v1903_v3, %v2439_v24 }
  0xbc   : > { %v786_v0 = vadd.f32 %v778_v26, %v2414_v11  ;;  %v787_v17 = vadd.f32 %v779_v1, %v2416_v12  ;;  %v2500_v12 = vmul.f32 %v1904_v27, %v2439_v24 }
  0xbd   : > { %v857_v5 = vmul.f32 %v1854_v57, %v2384_v37  ;;  %v856_v16 = vmul.f32 %v1853_v61, %v2384_v37  ;;  %v789_v21 = vadd.f32 %v781_v59, %v711_v25 }
  0xbf   : > { %v2392_v43 = vpop.permute.xlu0 %1846  ;;  %v864_v32 = vadd.f32 %v856_v16, %v786_v0  ;;  %v865_v54 = vadd.f32 %v857_v5, %v787_v17  ;;  %v2507_v39 = vadd.f32 %v2434_v22, %v789_v21  ;;  %v2531_v21 = vld [vmem:[%s2637_s5] ss:$0 sm:$0xff] }
  0xc0   : > { %v2460_v46 = vpop.permute.xlu2 %1916  ;;  %v1848_v41 = vunpack.i.l.bf16 %v2392_v43  ;;  %v1849_v14 = vunpack.i.h.bf16 %v2392_v43  ;;  %v1067_v43 = vmul.f32 %v1889_v6, %v2386_v38 }
  0xc1   : > { %v1068_v57 = vadd.f32 %v1060_v10, %v864_v32  ;;  %v1069_v22 = vadd.f32 %v1061_v53, %v865_v54  ;;  %v1918_v56 = vunpack.i.l.bf16 %v2460_v46 }
  0xc2   : > { %v2407_v63 = vpop.permute.xlu1 %1866  ;;  %v784_v29 = vmul.f32 %v1848_v41, %v2380_v34  ;;  %v785_v33 = vmul.f32 %v1849_v14, %v2380_v34 }
  0xc3   : > { %v1868_v19 = vunpack.i.l.bf16 %v2407_v63  ;;  %v1869_v30 = vunpack.i.h.bf16 %v2407_v63 }
  0xc4   : > { %v792_v15 = vadd.f32 %v784_v29, %v714_v50  ;;  %v793_v23 = vadd.f32 %v785_v33, %v715_v51 }
  0xc5   : > { %v862_v11 = vmul.f32 %v1868_v19, %v2384_v37  ;;  %v863_v34 = vmul.f32 %v1869_v30, %v2384_v37 }
  0xc7   : > { %v2441_v28 = vpop.permute.xlu0 %1861  ;;  %v870_v49 = vadd.f32 %v862_v11, %v792_v15  ;;  %v871_v41 = vadd.f32 %v863_v34, %v793_v23 }
  0xc8   : > { %v1932_v35 = vpop.permute.xlu2 %1931  ;;  %v1863_v63 = vunpack.i.l.bf16 %v2441_v28  ;;  %v1864_v40 = vunpack.i.h.bf16 %v2441_v28 }
  0xc9   : > { %v1934_v18 = vunpack.i.h.bf16 %v1932_v35  ;;  %v1933_v55 = vunpack.i.l.bf16 %v1932_v35  ;;  %v1074_v16 = vadd.f32 %v1066_v60, %v870_v49 }
  0xca   : > { %v2454_v44 = vpop.permute.xlu1 %1881  ;;  %v860_v61 = vmul.f32 %v1863_v63, %v2384_v37  ;;  %v861_v28 = vmul.f32 %v1864_v40, %v2384_v37 }
  0xcb   : > { %v1884_v9 = vunpack.i.h.bf16 %v2454_v44  ;;  %v1883_v45 = vunpack.i.l.bf16 %v2454_v44  ;;  %v1919_v44 = vunpack.i.h.bf16 %v2460_v46  ;;  %v1423_v37 = vmul.f32 %v1934_v18, %v2473_v47 }
  0xcc   : > { %v868_v5 = vadd.f32 %v860_v61, %v790_v7  ;;  %v869_v14 = vadd.f32 %v861_v28, %v791_v31  ;;  %v1422_v19 = vmul.f32 %v1933_v55, %v2473_v47  ;;  %v1075_v7 = vadd.f32 %v1067_v43, %v871_v41  ;;  %v2537_v31 = vld [vmem:[%s2638_s6] ss:$0 sm:$0xff] }
  0xcd   : > { %v1065_v51 = vmul.f32 %v1884_v9, %v2386_v38  ;;  %v1064_v53 = vmul.f32 %v1883_v45, %v2386_v38 }
  0xcf   : > { %v2475_v2 = vpop.permute.xlu0 %1876  ;;  %v1072_v17 = vadd.f32 %v1064_v53, %v868_v5  ;;  %v1073_v32 = vadd.f32 %v1065_v51, %v869_v14 }
  0xd0   : > { %v1947_v20 = vpop.permute.xlu2 %1946  ;;  %v1879_v60 = vunpack.i.h.bf16 %v2475_v2  ;;  %v1878_v45 = vunpack.i.l.bf16 %v2475_v2 }
  0xd1   : > { %v1949_v11 = vunpack.i.h.bf16 %v1947_v20  ;;  %v1948_v35 = vunpack.i.l.bf16 %v1947_v20  ;;  %v1152_v23 = vadd.f32 %v2510_v13, %v1072_v17 }
  0xd2   : > { %v2487_v52 = vpop.permute.xlu1 %1896  ;;  %v1062_v41 = vmul.f32 %v1878_v45, %v2386_v38 }
  0xd3   : > { %v1429_v18 = vmul.f32 %v1949_v11, %v2473_v47  ;;  %v1899_v2 = vunpack.i.h.bf16 %v2487_v52 }
  0xd5   : > { %v1143_v5 = vmul.f32 %v1899_v2, %v2439_v24 }
  0xd7   : > { %v1892_v42 = vpop.permute.xlu0 %1891 }
  0xd8   : > { %v1894_v48 = vunpack.i.h.bf16 %v1892_v42  ;;  %v1893_v8 = vunpack.i.l.bf16 %v1892_v42 }
  0xda   : > { %v1141_v50 = vmul.f32 %v1894_v48, %v2439_v24  ;;  %v1140_v62 = vmul.f32 %v1893_v8, %v2439_v24  ;;  %v1912_v59 = vpop.permute.xlu1 %1911 }
  0xdb   : > { %v1914_v1 = vunpack.i.h.bf16 %v1912_v59  ;;  %v1913_v26 = vunpack.i.l.bf16 %v1912_v59 }
  0xdc   : > { %v1148_v10 = vadd.f32 %v1140_v62, %v1068_v57  ;;  %v1149_v4 = vadd.f32 %v1141_v50, %v1069_v22  ;;  %v1428_v50 = vmul.f32 %v1948_v35, %v2473_v47  ;;  %v1898_v62 = vunpack.i.l.bf16 %v2487_v52 }
  0xdd   : > { %v1219_v25 = vmul.f32 %v1914_v1, %v2458_v58  ;;  %v1218_v6 = vmul.f32 %v1913_v26, %v2458_v58  ;;  %v1063_v26 = vmul.f32 %v1879_v60, %v2386_v38 }
  0xde   : > { %v1142_v52 = vmul.f32 %v1898_v62, %v2439_v24 }
  0xdf   : > { %v1226_v27 = vadd.f32 %v1218_v6, %v1148_v10  ;;  %v1227_v3 = vadd.f32 %v1219_v25, %v1149_v4  ;;  %v1907_v0 = vpop.permute.xlu0 %1906  ;;  %v1153_v6 = vadd.f32 %v2500_v12, %v1073_v32  ;;  %v1070_v12 = vadd.f32 %v1062_v41, %v2504_v36 }
  0xe0   : > { %v1909_v29 = vunpack.i.h.bf16 %v1907_v0  ;;  %v1908_v30 = vunpack.i.l.bf16 %v1907_v0 }
  0xe1   : > { %v1430_v54 = vadd.f32 %v1422_v19, %v1226_v27  ;;  %v1431_v33 = vadd.f32 %v1423_v37, %v1227_v3  ;;  %v1071_v3 = vadd.f32 %v1063_v26, %v2507_v39  ;;  %v1150_v32 = vadd.f32 %v1142_v52, %v1070_v12 }
  0xe2   : > { %v1147_v63 = vmul.f32 %v1909_v29, %v2439_v24  ;;  %v1146_v15 = vmul.f32 %v1908_v30, %v2439_v24  ;;  %v1927_v34 = vpop.permute.xlu1 %1926  ;;  %v1221_v39 = vmul.f32 %v1919_v44, %v2458_v58 }
  0xe3   : > { %v1442_v43 = vmul.f32 %v2531_v21, %v1430_v54  ;;  %v1443_v40 = vmul.f32 %v2531_v21, %v1431_v33  ;;  %v1929_v42 = vunpack.i.h.bf16 %v1927_v34  ;;  %v1928_v9 = vunpack.i.l.bf16 %v1927_v34 }
  0xe4   : > { %v1154_v48 = vadd.f32 %v1146_v15, %v1074_v16  ;;  %v1155_v8 = vadd.f32 %v1147_v63, %v1075_v7  ;;  %v1151_v60 = vadd.f32 %v1143_v5, %v1071_v3  ;;  %v1220_v63 = vmul.f32 %v1918_v56, %v2458_v58 }
  0xe5   : > { %v1454_v49 = vadd.f32 %v2537_v31, %v1442_v43  ;;  %v1455_v57 = vadd.f32 %v2537_v31, %v1443_v40  ;;  %v1225_v22 = vmul.f32 %v1929_v42, %v2458_v58  ;;  %v1224_v61 = vmul.f32 %v1928_v9, %v2458_v58 }
  0xe6   : > { %v1228_v45 = vadd.f32 %v1220_v63, %v1150_v32 }
  0xe7   : > { %v1462_v59 = vmax.f32 %v1454_v49, 0.0  ;;  %v1463_v13 = vmax.f32 %v1455_v57, 0.0  ;;  %v1232_v28 = vadd.f32 %v1224_v61, %v1154_v48  ;;  %v1233_v55 = vadd.f32 %v1225_v22, %v1155_v8  ;;  %v1922_v1 = vpop.permute.xlu0 %1921 }
  0xe8   : > { %v1924_v51 = vunpack.i.h.bf16 %v1922_v1  ;;  %v1923_v53 = vunpack.i.l.bf16 %v1922_v1  ;;  %v1229_v48 = vadd.f32 %v1221_v39, %v1151_v60 }
  0xe9   : > { %v1688_v10 = vpack.c.bf16 %v1463_v13, %v1462_v59  ;;  %v1436_v4 = vadd.f32 %v1428_v50, %v1232_v28  ;;  %v1437_v25 = vadd.f32 %v1429_v18, %v1233_v55 }
  0xea   : > { %v1223_v37 = vmul.f32 %v1924_v51, %v2458_v58  ;;  %v1222_v16 = vmul.f32 %v1923_v53, %v2458_v58  ;;  %v1942_v14 = vpop.permute.xlu1 %1941 }
  0xeb   : > { %1689 = vst [vmem:[%s2563_s12] sm:$0xff] %v1688_v10   ;;  %v1448_v38 = vmul.f32 %v2531_v21, %v1436_v4  ;;  %v1449_v19 = vmul.f32 %v2531_v21, %v1437_v25  ;;  %v1944_v20 = vunpack.i.h.bf16 %v1942_v14  ;;  %v1943_v27 = vunpack.i.l.bf16 %v1942_v14 }
  0xec   : > { %v1230_v24 = vadd.f32 %v1222_v16, %v1152_v23  ;;  %v1231_v0 = vadd.f32 %v1223_v37, %v1153_v6 }
  0xed   : > { %v1460_v17 = vadd.f32 %v2537_v31, %v1448_v38  ;;  %v1461_v29 = vadd.f32 %v2537_v31, %v1449_v19  ;;  %v1427_v30 = vmul.f32 %v1944_v20, %v2473_v47  ;;  %v1426_v7 = vmul.f32 %v1943_v27, %v2473_v47 }
  0xef   : > { %v1468_v54 = vmax.f32 %v1460_v17, 0.0  ;;  %v1469_v33 = vmax.f32 %v1461_v29, 0.0  ;;  %v1434_v11 = vadd.f32 %v1426_v7, %v1230_v24  ;;  %v1435_v36 = vadd.f32 %v1427_v30, %v1231_v0  ;;  %v1937_v35 = vpop.permute.xlu0 %1936 }
  0xf0   : > { %v1939_v15 = vunpack.i.h.bf16 %v1937_v35  ;;  %v1938_v34 = vunpack.i.l.bf16 %v1937_v35 }
  0xf1   : > { %v1703_v43 = vpack.c.bf16 %v1469_v33, %v1468_v54  ;;  %v1446_v40 = vmul.f32 %v2531_v21, %v1434_v11  ;;  %v1447_v42 = vmul.f32 %v2531_v21, %v1435_v36 }
  0xf2   : > { %v1425_v9 = vmul.f32 %v1939_v15, %v2473_v47  ;;  %v1424_v8 = vmul.f32 %v1938_v34, %v2473_v47 }
  0xf3   : > { %1707 = vst [vmem:[%s2563_s12 + $0x18] sm:$0xff] %v1703_v43   ;;  %v1458_v46 = vadd.f32 %v2537_v31, %v1446_v40  ;;  %v1459_v58 = vadd.f32 %v2537_v31, %v1447_v42 }
  0xf4   : > { %v1432_v44 = vadd.f32 %v1424_v8, %v1228_v45  ;;  %v1433_v56 = vadd.f32 %v1425_v9, %v1229_v48 }
  0xf5   : > { %v1466_v23 = vmax.f32 %v1458_v46, 0.0  ;;  %v1467_v49 = vmax.f32 %v1459_v58, 0.0 }
  0xf6   : > { %v1444_v57 = vmul.f32 %v2531_v21, %v1432_v44  ;;  %v1445_v47 = vmul.f32 %v2531_v21, %v1433_v56 }
  0xf7   : > { %v1698_v22 = vpack.c.bf16 %v1467_v49, %v1466_v23 }
  0xf8   : > { %v1456_v61 = vadd.f32 %v2537_v31, %v1444_v57  ;;  %v1457_v18 = vadd.f32 %v2537_v31, %v1445_v47 }
  0xf9   : > { %1706 = vst [vmem:[%s2563_s12 + $0x10] sm:$0xff] %v1698_v22  }
  0xfa   : > { %v1464_v50 = vmax.f32 %v1456_v61, 0.0  ;;  %v1465_v2 = vmax.f32 %v1457_v18, 0.0 }
  0xfc   : > { %v1693_v62 = vpack.c.bf16 %v1465_v2, %v1464_v50 }
  0xfe   : > { %1705 = vst [vmem:[%s2563_s12 + $0x8] sm:$0xff] %v1693_v62  }
  0xff   : > { %1979 = shalt.err (!%p1976_p5)
}
 0x100   : > { %s2033_s8 = smov 64   ;;  %s2034_s12 = smov 4  }
 0x101   : > { %1709 = dma.vmem_to_hbm [thread:$0]  (%p2115_p4), %s1502_s27, 512, %s1504_s19, %s1487_s20, %s2033_s8, %s2033_s8, %s2034_s12  }
 0x102 PF: > { %p1715_p6 = scmp.ge.s32.totalorder %s2030_s29, 2  ;;  %s1518_s17 = sand.u32 1, %s2010_s24  }
 0x103   : > { %s1519_s18 = scalar_lea.sflag [#allocation3], %s1518_s17 }
 0x104   : > { %p1712_p7 = pnand %p1715_p6, %p2122_p8 }
 0x106   : > { %p1713_p9 = pneg %p1712_p7 }
 0x108   : > { %2005 = dma.done.wait (%p1713_p9), %s1519_s18, 512  }
 0x109   : > { %2007 = vsyncadd (%p1713_p9), %s1519_s18, 4294966784  ;;  %s20_s29 = sadd.s32 1, %s2030_s29   ;;  %s2644_s24 = smov %s2014_s25 }
 0x10a   : > { %p17_p10 = scmp.ge.s32.totalorder %s20_s29, 4   ;;  %s2645_s25 = smov %s2018_s26 }
 0x10b   : > { %s2646_s26 = smov %s2128_s14  ;;  %s2647_s27 = smov %s2026_s28 }
 0x10c   : > { %s2648_s28 = smov %s2650_s9  ;;  %19 = sbr.rel (!%p17_p10) target bundleno = 4 (0x4), region = 106 }
 0x111   :  { %1525 = vsyncpa [#allocation3], 1 }
 0x112   :  { %1527 = vsyncpa [#allocation3 + $0x1], 1 }

</bundles_post_ra>
